<compile_context>
chip_gen: v5e
topology: v5e:2x2
jax: 0.10.0
libtpu: 0.0.40
codegen_flags: <defaults>
</compile_context>

<pallas_src>
import functools

import jax
import jax.numpy as jnp
from jax.experimental import pallas as pl
from jax.experimental.pallas import tpu as pltpu

IN_DIM = 768
HID_DIM = 384
OUT_DIM = 192
BN_EPS = 1e-5


# ----------------------------------------------------------------------------
# Kernel
# ----------------------------------------------------------------------------
def _mlp_kernel(x_ref, w1_ref, w2_ref, t_ref, o_ref):
    # Shift vectors (BN+bias folded): packed as [t1 || t2] along the lane axis.
    t1 = t_ref[:, :HID_DIM]          # (1, 384)
    t2 = t_ref[:, HID_DIM:]          # (1, 192)

    # Layer 1: (TB,768)bf16 @ (768,384)bf16 -> f32 acc -> shift -> ReLU
    h = jnp.dot(x_ref[...], w1_ref[...], preferred_element_type=jnp.float32)
    h = jnp.maximum(h + t1, 0.0)

    # Dropout: identity (eval mode).

    # Layer 2: (TB,384)bf16 @ (384,192)bf16 -> f32 acc -> shift -> ReLU
    y = jnp.dot(h.astype(jnp.bfloat16), w2_ref[...],
                preferred_element_type=jnp.float32)
    o_ref[...] = jnp.maximum(y + t2, 0.0).astype(o_ref.dtype)


# ----------------------------------------------------------------------------
# One-time parameter preparation (hoisted out of the per-call hot path)
# ----------------------------------------------------------------------------
def prepare_params(params):
    """Fold eval-mode BN into the Linear weights and pre-cast to bf16."""
    def fold(w, b, gamma, beta, rmean, rvar):
        scale = gamma / jnp.sqrt(rvar + BN_EPS)            # [out]
        w_folded = (w * scale[:, None]).T                  # [in, out], scale in W
        shift = beta + (b - rmean) * scale                 # [out]
        return w_folded.astype(jnp.bfloat16), shift.astype(jnp.float32)

    w1f, t1 = fold(params["w1"], params["b1"], params["g1"], params["be1"],
                   params["rm1"], params["rv1"])
    w2f, t2 = fold(params["w2"], params["b2"], params["g2"], params["be2"],
                   params["rm2"], params["rv2"])
    t = jnp.concatenate([t1, t2]).reshape(1, HID_DIM + OUT_DIM)   # (1, 576)
    return {"w1": w1f, "w2": w2f, "t": t}


def _default_block_b(batch):
    # v6e/v7x MXU is 256-wide -> TB=256 for large batches; small batches just
    # pad up to the f32/bf16 sublane multiple of 8.  (On v5e TB=128 is enough;
    # pass block_b=128 explicitly if tuning for v5e.)
    if batch >= 256:
        return 256
    return max(8, ((batch + 7) // 8) * 8)


# ----------------------------------------------------------------------------
# Forward wrapper
# ----------------------------------------------------------------------------
@functools.partial(jax.jit, static_argnames=("block_b",))
def discriminate_type_mi_forward(x, prepared, block_b=None):
    """x: [B, 768] float32. prepared: output of prepare_params. Returns [B, 192] f32."""
    B = x.shape[0]
    tb = block_b if block_b is not None else _default_block_b(B)

    x = x.astype(jnp.bfloat16)
    n_blocks = pl.cdiv(B, tb)
    Bp = n_blocks * tb
    if Bp != B:
        x = jnp.pad(x, ((0, Bp - B), (0, 0)))

    out = pl.pallas_call(
        _mlp_kernel,
        out_shape=jax.ShapeDtypeStruct((Bp, OUT_DIM), jnp.float32),
        grid=(n_blocks,),
        in_specs=[
            # x tile streams over the batch grid.
            pl.BlockSpec((tb, IN_DIM), lambda i: (i, 0)),
            # Weights / shifts are fetched once and stay VMEM-resident.
            pl.BlockSpec((IN_DIM, HID_DIM), lambda i: (0, 0)),
            pl.BlockSpec((HID_DIM, OUT_DIM), lambda i: (0, 0)),
            pl.BlockSpec((1, HID_DIM + OUT_DIM), lambda i: (0, 0)),
        ],
        out_specs=pl.BlockSpec((tb, OUT_DIM), lambda i: (i, 0)),
        compiler_params=pltpu.CompilerParams(
            dimension_semantics=("parallel",),   # megacore split on v7x
            vmem_limit_bytes=32 << 20,
        ),
    )(x, prepared["w1"], prepared["w2"], prepared["t"])

    return out[:B]


# ----------------------------------------------------------------------------
# Pure-JAX reference (f32, mirrors the PyTorch module in eval mode)
# ----------------------------------------------------------------------------
def _reference(x, params):
    def bn(h, gamma, beta, rmean, rvar):
        return (h - rmean) / jnp.sqrt(rvar + BN_EPS) * gamma + beta

    h = x @ params["w1"].T + params["b1"]
    h = jnp.maximum(bn(h, params["g1"], params["be1"], params["rm1"], params["rv1"]), 0.0)
    y = h @ params["w2"].T + params["b2"]
    y = jnp.maximum(bn(y, params["g2"], params["be2"], params["rm2"], params["rv2"]), 0.0)
    return y


def make_params(key):
    ks = jax.random.split(key, 8)
    scale1 = 1.0 / jnp.sqrt(jnp.float32(IN_DIM))
    scale2 = 1.0 / jnp.sqrt(jnp.float32(HID_DIM))
    return {
        # fc1 / fc2 (PyTorch Linear: weight [out, in], bias [out])
        "w1": jax.random.uniform(ks[0], (HID_DIM, IN_DIM), jnp.float32, -scale1, scale1),
        "b1": jax.random.uniform(ks[1], (HID_DIM,), jnp.float32, -scale1, scale1),
        "w2": jax.random.uniform(ks[2], (OUT_DIM, HID_DIM), jnp.float32, -scale2, scale2),
        "b2": jax.random.uniform(ks[3], (OUT_DIM,), jnp.float32, -scale2, scale2),
        # BatchNorm1d(384): gamma/beta/running stats (synthetic, deterministic)
        "g1": 1.0 + 0.1 * jax.random.normal(ks[4], (HID_DIM,), jnp.float32),
        "be1": 0.1 * jax.random.normal(ks[5], (HID_DIM,), jnp.float32),
        "rm1": jnp.zeros((HID_DIM,), jnp.float32),
        "rv1": jnp.ones((HID_DIM,), jnp.float32),
        # BatchNorm1d(192)
        "g2": 1.0 + 0.1 * jax.random.normal(ks[6], (OUT_DIM,), jnp.float32),
        "be2": 0.1 * jax.random.normal(ks[7], (OUT_DIM,), jnp.float32),
        "rm2": jnp.zeros((OUT_DIM,), jnp.float32),
        "rv2": jnp.ones((OUT_DIM,), jnp.float32),
    }


if __name__ == "__main__":
    key = jax.random.PRNGKey(0)
    kx, kp = jax.random.split(key)
    B = 8  # small batch; feature dims fixed by the module (768 -> 384 -> 192)
    x = jax.random.normal(kx, (B, IN_DIM), jnp.float32)
    params = make_params(kp)

    prepared = prepare_params(params)  # one-time BN fold / transpose / bf16 cast
    out = discriminate_type_mi_forward(x, prepared)
    out = jax.block_until_ready(out)

    ref = _reference(x, params)
    assert out.shape == (B, OUT_DIM)
    # bf16 weights/activations with f32 accumulation -> loosened tolerance.
    assert jnp.allclose(out, ref, atol=3e-2, rtol=3e-2), "mismatch vs reference"
    print("KERNEL_OK")
</pallas_src>

<mosaic_0001>
module attributes {stable_mosaic.version = 11 : i64} {
  func.func @_mlp_kernel(%arg0: i32, %arg1: memref<8x768xbf16, #tpu.memory_space<vmem>>, %arg2: memref<768x384xbf16, #tpu.memory_space<vmem>>, %arg3: memref<384x192xbf16, #tpu.memory_space<vmem>>, %arg4: memref<1x576xf32, #tpu.memory_space<vmem>>, %arg5: memref<8x192xf32, #tpu.memory_space<vmem>>) attributes {dimension_semantics = [#tpu.dimension_semantics<parallel>], iteration_bounds = array<i64: 1>, scalar_prefetch = 0 : i64, scratch_operands = 0 : i64, tpu.core_type = #tpu.core_type<tc>, window_params = [{transform_indices = @transform_0, window_bounds = array<i64: 8, 768>}, {pipeline_mode = #tpu.pipeline_mode<synchronous>, transform_indices = @transform_1, window_bounds = array<i64: 768, 384>}, {pipeline_mode = #tpu.pipeline_mode<synchronous>, transform_indices = @transform_2, window_bounds = array<i64: 384, 192>}, {pipeline_mode = #tpu.pipeline_mode<synchronous>, transform_indices = @transform_3, window_bounds = array<i64: 1, 576>}, {transform_indices = @transform_4, window_bounds = array<i64: 8, 192>}]} {
    %c0 = arith.constant 0 : index
    %c0_0 = arith.constant 0 : index
    %0 = vector.load %arg4[%c0, %c0_0] : memref<1x576xf32, #tpu.memory_space<vmem>>, vector<1x384xf32>
    %c0_1 = arith.constant 0 : index
    %c384 = arith.constant 384 : index
    %1 = vector.load %arg4[%c0_1, %c384] : memref<1x576xf32, #tpu.memory_space<vmem>>, vector<1x192xf32>
    %c0_2 = arith.constant 0 : index
    %c0_3 = arith.constant 0 : index
    %2 = vector.load %arg1[%c0_2, %c0_3] : memref<8x768xbf16, #tpu.memory_space<vmem>>, vector<8x768xbf16>
    %c0_4 = arith.constant 0 : index
    %c0_5 = arith.constant 0 : index
    %3 = vector.load %arg2[%c0_4, %c0_5] : memref<768x384xbf16, #tpu.memory_space<vmem>>, vector<768x384xbf16>
    %cst = arith.constant dense<0.000000e+00> : vector<8x384xf32>
    %4 = tpu.matmul %2, %3, %cst {dimension_numbers = #tpu.dot_dimension_numbers<[1], [0], [0], [1], [0, 0, 1, 1], [], []>} : vector<8x768xbf16>, vector<768x384xbf16>, vector<8x384xf32> -> vector<8x384xf32>
    %5 = vector.broadcast %0 : vector<1x384xf32> to vector<8x384xf32>
    %6 = arith.addf %4, %5 : vector<8x384xf32>
    %cst_6 = arith.constant 0.000000e+00 : f32
    %7 = vector.broadcast %cst_6 : f32 to vector<8x384xf32>
    %8 = arith.maximumf %6, %7 : vector<8x384xf32>
    %9 = arith.truncf %8 : vector<8x384xf32> to vector<8x384xbf16>
    %c0_7 = arith.constant 0 : index
    %c0_8 = arith.constant 0 : index
    %10 = vector.load %arg3[%c0_7, %c0_8] : memref<384x192xbf16, #tpu.memory_space<vmem>>, vector<384x192xbf16>
    %cst_9 = arith.constant dense<0.000000e+00> : vector<8x192xf32>
    %11 = tpu.matmul %9, %10, %cst_9 {dimension_numbers = #tpu.dot_dimension_numbers<[1], [0], [0], [1], [0, 0, 1, 1], [], []>} : vector<8x384xbf16>, vector<384x192xbf16>, vector<8x192xf32> -> vector<8x192xf32>
    %12 = vector.broadcast %1 : vector<1x192xf32> to vector<8x192xf32>
    %13 = arith.addf %11, %12 : vector<8x192xf32>
    %cst_10 = arith.constant 0.000000e+00 : f32
    %14 = vector.broadcast %cst_10 : f32 to vector<8x192xf32>
    %15 = arith.maximumf %13, %14 : vector<8x192xf32>
    %c0_11 = arith.constant 0 : index
    %c0_12 = arith.constant 0 : index
    %16 = vector.load %arg5[%c0_11, %c0_12] : memref<8x192xf32, #tpu.memory_space<vmem>>, vector<8x192xf32>
    tpu.vector_store %arg5[%c0_11, %c0_12], %15 {strides = array<i32>} : memref<8x192xf32, #tpu.memory_space<vmem>>, vector<8x192xf32>,
    return
  }
  func.func @transform_0(%arg0: i32) -> (i32, i32) {
    %c0_i32 = arith.constant 0 : i32
    %c0_i32_0 = arith.constant 0 : i32
    return %arg0, %c0_i32 : i32, i32
  }
  func.func @transform_1(%arg0: i32) -> (i32, i32) {
    %c0_i32 = arith.constant 0 : i32
    %c0_i32_0 = arith.constant 0 : i32
    %c0_i32_1 = arith.constant 0 : i32
    return %c0_i32, %c0_i32_0 : i32, i32
  }
  func.func @transform_2(%arg0: i32) -> (i32, i32) {
    %c0_i32 = arith.constant 0 : i32
    %c0_i32_0 = arith.constant 0 : i32
    %c0_i32_1 = arith.constant 0 : i32
    return %c0_i32, %c0_i32_0 : i32, i32
  }
  func.func @transform_3(%arg0: i32) -> (i32, i32) {
    %c0_i32 = arith.constant 0 : i32
    %c0_i32_0 = arith.constant 0 : i32
    %c0_i32_1 = arith.constant 0 : i32
    return %c0_i32, %c0_i32_0 : i32, i32
  }
  func.func @transform_4(%arg0: i32) -> (i32, i32) {
    %c0_i32 = arith.constant 0 : i32
    %c0_i32_0 = arith.constant 0 : i32
    return %arg0, %c0_i32 : i32, i32
  }
}

</mosaic_0001>

<bundles_post_ra>
// kernel: discriminate_type_mi_forward.1
= control target key start
LH: loop header
LB: loop body
LE: loop exit
PB: predicated region body
PF: predicated region fallthrough
CT: control target
= control target key end

     0   :  { %9 = vsyncpa [#allocation3], 0  ;;  %s3049_s0 = inlined_call_operand.vmem [shape: bf16[8,768], index: 0, kind: input, shape index: {}]   ;;  %s3050_s1 = inlined_call_operand.hbm [shape: bf16[768,384], index: 1, kind: input, shape index: {}]   ;;  %s3051_s2 = inlined_call_operand.vmem [shape: bf16[384,192], index: 2, kind: input, shape index: {}]   ;;  %s3052_s3 = inlined_call_operand.vmem [shape: f32[1,576], index: 3, kind: input, shape index: {}]   ;;  %s3053_s4 = inlined_call_operand.hbm [shape: f32[8,192], index: 4, kind: output, shape index: {}]  }
   0x1   :  { %10 = vsyncpa [#allocation4], 0  ;;  %s17_s17 = sshll.u32 %s3050_s1, 4  ;;  %s2676_s18 = smov [#allocation2]   ;;  %s18_s17 = int_to_ptr.hbm [resolvable:$true] %s17_s17 }
   0x2   :  { %s19_s19 = sshll.u32 %s2676_s18, 4  ;;  %s2677_s20 = smov 192   ;;  %s20_s19 = int_to_ptr.vmem [resolvable:$true] %s19_s19 }
   0x3   :  { %s2678_s21 = smov 12  }
   0x4   :  { %25 = dma.hbm_to_vmem [thread:$0]  %s18_s17, 18432, %s20_s19, [#allocation3], %s2677_s20, %s2677_s20, %s2678_s21  }
   0x5   :  { %2672 = dma.done.wait [#allocation3], 18432  }
   0x6   :  { %2673 = vsyncadd [#allocation3], 4294948864  ;;  %v1746_v0 = vld [vmem:[#allocation2 + $0xa8] sm:$0xf]  ;;  %v2450_v1 = vld [vmem:[#allocation2 + $0xb0] sm:$0xf0] }
   0x7   :  { %v1842_v2 = vld [vmem:[#allocation2 + $0x168] sm:$0xf]  ;;  %v1747_v3 = vor.u32 %v2450_v1, %v1746_v0  ;;  %v2474_v4 = vld [vmem:[#allocation2 + $0x170] sm:$0xf0]  ;;  %v1734_v11 = vld [vmem:[#allocation2 + $0x90] sm:$0xf] }
   0x8   :  { %v1938_v5 = vld [vmem:[#allocation2 + $0x228] sm:$0xf]  ;;  %v2498_v6 = vld [vmem:[#allocation2 + $0x230] sm:$0xf0]  ;;  %v1843_v7 = vor.u32 %v2474_v4, %v1842_v2  ;;  %v2447_v13 = vld [vmem:[#allocation2 + $0x98] sm:$0xf0] }
   0x9   :  { %v1939_v8 = vor.u32 %v2498_v6, %v1938_v5  ;;  %v2034_v9 = vld [vmem:[#allocation2 + $0x2e8] sm:$0xf]  ;;  %v2522_v10 = vld [vmem:[#allocation2 + $0x2f0] sm:$0xf0]  ;;  %1027 = vmatpush.bf16.msra.mxu0 %v1747_v3  ;;  %v1830_v14 = vld [vmem:[#allocation2 + $0x150] sm:$0xf]  ;;  %v1735_v16 = vor.u32 %v2447_v13, %v1734_v11 }
   0xa   :  { %v2035_v12 = vor.u32 %v2522_v10, %v2034_v9  ;;  %v2471_v15 = vld [vmem:[#allocation2 + $0x158] sm:$0xf0]  ;;  %1040 = vmatpush.bf16.msra.mxu1 %v1843_v7  ;;  %v1926_v18 = vld [vmem:[#allocation2 + $0x210] sm:$0xf]  ;;  %v1722_v23 = vld [vmem:[#allocation2 + $0x78] sm:$0xf] }
   0xb   :  { %1053 = vmatpush.bf16.msra.mxu2 %v1939_v8  ;;  %v1831_v17 = vor.u32 %v2471_v15, %v1830_v14  ;;  %v2495_v19 = vld [vmem:[#allocation2 + $0x218] sm:$0xf0]  ;;  %v2022_v20 = vld [vmem:[#allocation2 + $0x2d0] sm:$0xf]  ;;  %v2444_v24 = vld [vmem:[#allocation2 + $0x80] sm:$0xf0] }
   0xc   :  { %1066 = vmatpush.bf16.msra.mxu3 %v2035_v12  ;;  %v1927_v21 = vor.u32 %v2495_v19, %v1926_v18  ;;  %v2519_v22 = vld [vmem:[#allocation2 + $0x2d8] sm:$0xf0]  ;;  %v1818_v26 = vld [vmem:[#allocation2 + $0x138] sm:$0xf]  ;;  %v2468_v27 = vld [vmem:[#allocation2 + $0x140] sm:$0xf0]  ;;  %v1723_v29 = vor.u32 %v2444_v24, %v1722_v23 }
   0xd   :  { %v2023_v25 = vor.u32 %v2519_v22, %v2022_v20  ;;  %v1914_v28 = vld [vmem:[#allocation2 + $0x1f8] sm:$0xf]  ;;  %1028 = vmatpush.bf16.msra.mxu0 %v1735_v16  ;;  %v2492_v30 = vld [vmem:[#allocation2 + $0x200] sm:$0xf0]  ;;  %v1819_v33 = vor.u32 %v2468_v27, %v1818_v26  ;;  %v1710_v35 = vld [vmem:[#allocation2 + $0x60] sm:$0xf] }
   0xe   :  { %v2010_v31 = vld [vmem:[#allocation2 + $0x2b8] sm:$0xf]  ;;  %v2516_v32 = vld [vmem:[#allocation2 + $0x2c0] sm:$0xf0]  ;;  %1041 = vmatpush.bf16.msra.mxu1 %v1831_v17  ;;  %v1915_v34 = vor.u32 %v2492_v30, %v1914_v28  ;;  %v2441_v36 = vld [vmem:[#allocation2 + $0x68] sm:$0xf0] }
   0xf   :  { %1054 = vmatpush.bf16.msra.mxu2 %v1927_v21  ;;  %v1806_v37 = vld [vmem:[#allocation2 + $0x120] sm:$0xf]  ;;  %v2011_v38 = vor.u32 %v2516_v32, %v2010_v31  ;;  %v2465_v39 = vld [vmem:[#allocation2 + $0x128] sm:$0xf0]  ;;  %v1711_v44 = vor.u32 %v2441_v36, %v1710_v35  ;;  %v1698_v47 = vld [vmem:[#allocation2 + $0x48] sm:$0xf] }
  0x10   :  { %1067 = vmatpush.bf16.msra.mxu3 %v2023_v25  ;;  %v1902_v40 = vld [vmem:[#allocation2 + $0x1e0] sm:$0xf]  ;;  %v2489_v41 = vld [vmem:[#allocation2 + $0x1e8] sm:$0xf0]  ;;  %v1807_v45 = vor.u32 %v2465_v39, %v1806_v37  ;;  %v2438_v48 = vld [vmem:[#allocation2 + $0x50] sm:$0xf0] }
  0x11   :  { %v1998_v42 = vld [vmem:[#allocation2 + $0x2a0] sm:$0xf]  ;;  %v2513_v43 = vld [vmem:[#allocation2 + $0x2a8] sm:$0xf0]  ;;  %1029 = vmatpush.bf16.msra.mxu0 %v1723_v29  ;;  %v1903_v46 = vor.u32 %v2489_v41, %v1902_v40  ;;  %v1794_v49 = vld [vmem:[#allocation2 + $0x108] sm:$0xf]  ;;  %v1699_v56 = vor.u32 %v2438_v48, %v1698_v47 }
  0x12   :  { %1042 = vmatpush.bf16.msra.mxu1 %v1819_v33  ;;  %v1999_v50 = vor.u32 %v2513_v43, %v1998_v42  ;;  %v2462_v51 = vld [vmem:[#allocation2 + $0x110] sm:$0xf0]  ;;  %v1890_v52 = vld [vmem:[#allocation2 + $0x1c8] sm:$0xf]  ;;  %v1686_v59 = vld [vmem:[#allocation2 + $0x30] sm:$0xf] }
  0x13   :  { %1055 = vmatpush.bf16.msra.mxu2 %v1915_v34  ;;  %v2486_v53 = vld [vmem:[#allocation2 + $0x1d0] sm:$0xf0]  ;;  %v1986_v54 = vld [vmem:[#allocation2 + $0x288] sm:$0xf]  ;;  %v1795_v57 = vor.u32 %v2462_v51, %v1794_v49  ;;  %v2435_v60 = vld [vmem:[#allocation2 + $0x38] sm:$0xf0] }
  0x14   :  { %1068 = vmatpush.bf16.msra.mxu3 %v2011_v38  ;;  %v2510_v55 = vld [vmem:[#allocation2 + $0x290] sm:$0xf0]  ;;  %v1891_v58 = vor.u32 %v2486_v53, %v1890_v52  ;;  %v1782_v61 = vld [vmem:[#allocation2 + $0xf0] sm:$0xf]  ;;  %v2459_v63 = vld [vmem:[#allocation2 + $0xf8] sm:$0xf0]  ;;  %v1687_v4 = vor.u32 %v2435_v60, %v1686_v59 }
  0x15   :  { %1030 = vmatpush.bf16.msra.mxu0 %v1711_v44  ;;  %v1987_v62 = vor.u32 %v2510_v55, %v1986_v54  ;;  %v1878_v0 = vld [vmem:[#allocation2 + $0x1b0] sm:$0xf]  ;;  %v2483_v1 = vld [vmem:[#allocation2 + $0x1b8] sm:$0xf0]  ;;  %v1783_v5 = vor.u32 %v2459_v63, %v1782_v61  ;;  %v1674_v7 = vld [vmem:[#allocation2 + $0x18] sm:$0xf] }
  0x16   :  { %1043 = vmatpush.bf16.msra.mxu1 %v1807_v45  ;;  %v1974_v2 = vld [vmem:[#allocation2 + $0x270] sm:$0xf]  ;;  %v2507_v3 = vld [vmem:[#allocation2 + $0x278] sm:$0xf0]  ;;  %v1879_v6 = vor.u32 %v2483_v1, %v1878_v0  ;;  %v2432_v8 = vld [vmem:[#allocation2 + $0x20] sm:$0xf0] }
  0x17   :  { %1056 = vmatpush.bf16.msra.mxu2 %v1903_v46  ;;  %v1770_v9 = vld [vmem:[#allocation2 + $0xd8] sm:$0xf]  ;;  %v1975_v10 = vor.u32 %v2507_v3, %v1974_v2  ;;  %v2456_v11 = vld [vmem:[#allocation2 + $0xe0] sm:$0xf0]  ;;  %v1675_v16 = vor.u32 %v2432_v8, %v1674_v7  ;;  %v1662_v17 = vld [vmem:[#allocation2] sm:$0xf] }
  0x18   :  { %1069 = vmatpush.bf16.msra.mxu3 %v1999_v50  ;;  %v1866_v12 = vld [vmem:[#allocation2 + $0x198] sm:$0xf]  ;;  %v2480_v13 = vld [vmem:[#allocation2 + $0x1a0] sm:$0xf0]  ;;  %v2429_v18 = vld [vmem:[#allocation2 + $0x8] sm:$0xf0]  ;;  %v1771_v19 = vor.u32 %v2456_v11, %v1770_v9 }
  0x19   :  { %1031 = vmatpush.bf16.msra.mxu0 %v1699_v56  ;;  %v1962_v14 = vld [vmem:[#allocation2 + $0x258] sm:$0xf]  ;;  %v2504_v15 = vld [vmem:[#allocation2 + $0x260] sm:$0xf0]  ;;  %v1867_v20 = vor.u32 %v2480_v13, %v1866_v12  ;;  %v1758_v21 = vld [vmem:[#allocation2 + $0xc0] sm:$0xf]  ;;  %v1663_v31 = vor.u32 %v2429_v18, %v1662_v17 }
  0x1a   :  { %1044 = vmatpush.bf16.msra.mxu1 %v1795_v57  ;;  %v2453_v22 = vld [vmem:[#allocation2 + $0xc8] sm:$0xf0]  ;;  %v1854_v23 = vld [vmem:[#allocation2 + $0x180] sm:$0xf]  ;;  %v1963_v24 = vor.u32 %v2504_v15, %v1962_v14  ;;  %v2130_v26 = vld [vmem:[#allocation2 + $0x3a8] sm:$0xf] }
  0x1b   :  { %1057 = vmatpush.bf16.msra.mxu2 %v1891_v58  ;;  %v2477_v25 = vld [vmem:[#allocation2 + $0x188] sm:$0xf0]  ;;  %v2546_v27 = vld [vmem:[#allocation2 + $0x3b0] sm:$0xf0]  ;;  %v2226_v28 = vld [vmem:[#allocation2 + $0x468] sm:$0xf]  ;;  %v1759_v35 = vor.u32 %v2453_v22, %v1758_v21 }
  0x1c   :  { %1070 = vmatpush.bf16.msra.mxu3 %v1987_v62  ;;  %v2570_v29 = vld [vmem:[#allocation2 + $0x470] sm:$0xf0]  ;;  %v2449_v30 = vld [vmem:[#allocation2 + $0xac] sm:$0xf]  ;;  %v1748_v32 = vld [vmem:[#allocation2 + $0xb4] sm:$0xf0]  ;;  %v1855_v36 = vor.u32 %v2477_v25, %v1854_v23  ;;  %v2131_v39 = vor.u32 %v2546_v27, %v2130_v26 }
  0x1d   :  { %1032 = vmatpush.bf16.msra.mxu0 %v1687_v4  ;;  %v1950_v33 = vld [vmem:[#allocation2 + $0x240] sm:$0xf]  ;;  %v2501_v34 = vld [vmem:[#allocation2 + $0x248] sm:$0xf0]  ;;  %v1844_v38 = vld [vmem:[#allocation2 + $0x174] sm:$0xf0]  ;;  %v2227_v40 = vor.u32 %v2570_v29, %v2226_v28  ;;  %v1751_v42 = vor.u32 %v2449_v30, %v1748_v32 }
  0x1e   :  { %1045 = vmatpush.bf16.msra.mxu1 %v1783_v5  ;;  %v2473_v37 = vld [vmem:[#allocation2 + $0x16c] sm:$0xf]  ;;  %v2118_v41 = vld [vmem:[#allocation2 + $0x390] sm:$0xf]  ;;  %v1951_v43 = vor.u32 %v2501_v34, %v1950_v33  ;;  %v2543_v44 = vld [vmem:[#allocation2 + $0x398] sm:$0xf0] }
  0x1f   :  { %1058 = vmatpush.bf16.msra.mxu2 %v1879_v6  ;;  %v2214_v45 = vld [vmem:[#allocation2 + $0x450] sm:$0xf]  ;;  %v2567_v46 = vld [vmem:[#allocation2 + $0x458] sm:$0xf0]  ;;  %v1847_v47 = vor.u32 %v2473_v37, %v1844_v38  ;;  %v2446_v48 = vld [vmem:[#allocation2 + $0x94] sm:$0xf]  ;;  %v2119_v53 = vor.u32 %v2543_v44, %v2118_v41 }
  0x20   :  { %1071 = vmatpush.bf16.msra.mxu3 %v1975_v10  ;;  %v1736_v49 = vld [vmem:[#allocation2 + $0x9c] sm:$0xf0]  ;;  %v2470_v50 = vld [vmem:[#allocation2 + $0x154] sm:$0xf]  ;;  %v2215_v54 = vor.u32 %v2567_v46, %v2214_v45  ;;  %v2106_v55 = vld [vmem:[#allocation2 + $0x378] sm:$0xf] }
  0x21   :  { %1033 = vmatpush.bf16.msra.mxu0 %v1675_v16  ;;  %v1832_v51 = vld [vmem:[#allocation2 + $0x15c] sm:$0xf0]  ;;  %v1739_v58 = vor.u32 %v2446_v48, %v1736_v49  ;;  %v2540_v59 = vld [vmem:[#allocation2 + $0x380] sm:$0xf0]  ;;  %v2202_v60 = vld [vmem:[#allocation2 + $0x438] sm:$0xf] }
  0x22   :  { %1046 = vmatpush.bf16.msra.mxu1 %v1771_v19  ;;  %v36_v52 = vld [vmem:[%s3049_s0] sm:$0xff]  ;;  %v1835_v62 = vor.u32 %v2470_v50, %v1832_v51  ;;  %v2443_v63 = vld [vmem:[#allocation2 + $0x7c] sm:$0xf]  ;;  %v1724_v0 = vld [vmem:[#allocation2 + $0x84] sm:$0xf0]  ;;  %v2107_v5 = vor.u32 %v2540_v59, %v2106_v55  ;;  %s2679_s26 = smov [#allocation5]  }
  0x23   :  { %1059 = vmatpush.bf16.msra.mxu2 %v1867_v20  ;;  %v241_v56 = vunpack.c.l.b16 %v36_v52  ;;  %v242_v57 = vunpack.c.h.b16 %v36_v52  ;;  %v2564_v61 = vld [vmem:[#allocation2 + $0x440] sm:$0xf0]  ;;  %v2467_v3 = vld [vmem:[#allocation2 + $0x13c] sm:$0xf]  ;;  %v1820_v4 = vld [vmem:[#allocation2 + $0x144] sm:$0xf0]  ;;  %v1727_v9 = vor.u32 %v2443_v63, %v1724_v0 }
  0x24   :  { %1072 = vmatpush.bf16.msra.mxu3 %v1963_v24  ;;  %v2203_v6 = vor.u32 %v2564_v61, %v2202_v60  ;;  %v2094_v7 = vld [vmem:[#allocation2 + $0x360] sm:$0xf]  ;;  %v37_v8 = vld [vmem:[%s3049_s0 + $0x8] sm:$0xff]  ;;  %v1823_v15 = vor.u32 %v2467_v3, %v1820_v4  ;;  %v2440_v16 = vld [vmem:[#allocation2 + $0x64] sm:$0xf]  ;;  %s1650_s29 = sshll.u32 %s3053_s4, 4  ;;  %s1651_s29 = int_to_ptr.hbm [resolvable:$true] %s1650_s29 }
  0x25   :  { %1034 = vmatpush.bf16.msra.mxu0 %v1663_v31  ;;  %v2711_v1 = vpack.c.b16 %v241_v56, %v241_v56  ;;  %v2713_v2 = vpack.c.b16 %v242_v57, %v242_v57  ;;  %v2537_v10 = vld [vmem:[#allocation2 + $0x368] sm:$0xf0]  ;;  %v2190_v11 = vld [vmem:[#allocation2 + $0x420] sm:$0xf]  ;;  %v243_v13 = vunpack.c.l.b16 %v37_v8  ;;  %v244_v14 = vunpack.c.h.b16 %v37_v8  ;;  %v1712_v17 = vld [vmem:[#allocation2 + $0x6c] sm:$0xf0] }
  0x26   :  { %1047 = vmatpush.bf16.msra.mxu1 %v1759_v35  ;;  %v2561_v12 = vld [vmem:[#allocation2 + $0x428] sm:$0xf0]  ;;  %v2464_v18 = vld [vmem:[#allocation2 + $0x124] sm:$0xf]  ;;  %v1808_v19 = vld [vmem:[#allocation2 + $0x12c] sm:$0xf0]  ;;  %v2095_v22 = vor.u32 %v2537_v10, %v2094_v7  ;;  %v1715_v25 = vor.u32 %v2440_v16, %v1712_v17 }
  0x27   :  { %1060 = vmatpush.bf16.msra.mxu2 %v1855_v36  ;;  %v2720_v20 = vpack.c.b16 %v243_v13, %v243_v13  ;;  %v2722_v21 = vpack.c.b16 %v244_v14, %v244_v14  ;;  %v2191_v23 = vor.u32 %v2561_v12, %v2190_v11  ;;  %v2082_v24 = vld [vmem:[#allocation2 + $0x348] sm:$0xf]  ;;  %v2534_v26 = vld [vmem:[#allocation2 + $0x350] sm:$0xf0]  ;;  %v1811_v29 = vor.u32 %v2464_v18, %v1808_v19  ;;  %v2437_v30 = vld [vmem:[#allocation2 + $0x4c] sm:$0xf] }
  0x28   :  { %1073 = vmatpush.bf16.msra.mxu3 %v1951_v43  ;;  %1035 = vmatmul.bf16.vlgmr.msra.gmra.mxu0 %v2711_v1  ;;  %v2178_v27 = vld [vmem:[#allocation2 + $0x408] sm:$0xf]  ;;  %v2558_v28 = vld [vmem:[#allocation2 + $0x410] sm:$0xf0]  ;;  %v1700_v31 = vld [vmem:[#allocation2 + $0x54] sm:$0xf0]  ;;  %v2083_v34 = vor.u32 %v2534_v26, %v2082_v24 }
  0x29   :  { %1079 = vmatpush.bf16.msrb.mxu0 %v2131_v39  ;;  %1048 = vmatmul.bf16.vlgmr.msra.gmra.mxu1 %v2713_v2  ;;  %v2461_v32 = vld [vmem:[#allocation2 + $0x10c] sm:$0xf]  ;;  %v1796_v33 = vld [vmem:[#allocation2 + $0x114] sm:$0xf0]  ;;  %v2179_v35 = vor.u32 %v2558_v28, %v2178_v27  ;;  %v2070_v36 = vld [vmem:[#allocation2 + $0x330] sm:$0xf]  ;;  %v1703_v37 = vor.u32 %v2437_v30, %v1700_v31 }
  0x2a   :  { %1092 = vmatpush.bf16.msrb.mxu1 %v2227_v40  ;;  %1061 = vmatmul.bf16.vlgmr.msra.gmra.mxu2 %v2720_v20  ;;  %v2531_v38 = vld [vmem:[#allocation2 + $0x338] sm:$0xf0]  ;;  %v2166_v39 = vld [vmem:[#allocation2 + $0x3f0] sm:$0xf]  ;;  %v1799_v41 = vor.u32 %v2461_v32, %v1796_v33  ;;  %v1688_v43 = vld [vmem:[#allocation2 + $0x3c] sm:$0xf0] }
  0x2b   :  { %1105 = vmatpush.bf16.msrb.mxu2 %v1751_v42  ;;  %1074 = vmatmul.bf16.vlgmr.msra.gmra.mxu3 %v2722_v21  ;;  %v2555_v40 = vld [vmem:[#allocation2 + $0x3f8] sm:$0xf0]  ;;  %v2434_v42 = vld [vmem:[#allocation2 + $0x34] sm:$0xf]  ;;  %v1784_v45 = vld [vmem:[#allocation2 + $0xfc] sm:$0xf0]  ;;  %v2071_v46 = vor.u32 %v2531_v38, %v2070_v36 }
  0x2c   :  { %1118 = vmatpush.bf16.msrb.mxu3 %v1847_v47  ;;  %v2458_v44 = vld [vmem:[#allocation2 + $0xf4] sm:$0xf]  ;;  %v2167_v47 = vor.u32 %v2555_v40, %v2166_v39  ;;  %v2058_v48 = vld [vmem:[#allocation2 + $0x318] sm:$0xf]  ;;  %v1691_v49 = vor.u32 %v2434_v42, %v1688_v43  ;;  %v2528_v50 = vld [vmem:[#allocation2 + $0x320] sm:$0xf0] }
  0x2d   :  { %1080 = vmatpush.bf16.msrb.mxu0 %v2119_v53  ;;  %v2154_v51 = vld [vmem:[#allocation2 + $0x3d8] sm:$0xf]  ;;  %v2552_v52 = vld [vmem:[#allocation2 + $0x3e0] sm:$0xf0]  ;;  %v1787_v53 = vor.u32 %v2458_v44, %v1784_v45  ;;  %v1676_v55 = vld [vmem:[#allocation2 + $0x24] sm:$0xf0]  ;;  %v2059_v59 = vor.u32 %v2528_v50, %v2058_v48 }
  0x2e   :  { %1093 = vmatpush.bf16.msrb.mxu1 %v2215_v54  ;;  %v2431_v54 = vld [vmem:[#allocation2 + $0x1c] sm:$0xf]  ;;  %v1772_v57 = vld [vmem:[#allocation2 + $0xe4] sm:$0xf0]  ;;  %v2155_v60 = vor.u32 %v2552_v52, %v2154_v51  ;;  %v2525_v61 = vld [vmem:[#allocation2 + $0x308] sm:$0xf0] }
  0x2f   :  { %1106 = vmatpush.bf16.msrb.mxu2 %v1739_v58  ;;  %v2455_v56 = vld [vmem:[#allocation2 + $0xdc] sm:$0xf]  ;;  %v2046_v58 = vld [vmem:[#allocation2 + $0x300] sm:$0xf]  ;;  %v38_v63 = vld [vmem:[%s3049_s0 + $0x10] sm:$0xff]  ;;  %v1679_v0 = vor.u32 %v2431_v54, %v1676_v55  ;;  %s1648_s0 = sshll.u32 %s2679_s26, 4  ;;  %s1649_s0 = int_to_ptr.vmem [resolvable:$true] %s1648_s0 }
  0x30   :  { %1119 = vmatpush.bf16.msrb.mxu3 %v1835_v62  ;;  %v2142_v62 = vld [vmem:[#allocation2 + $0x3c0] sm:$0xf]  ;;  %v2549_v3 = vld [vmem:[#allocation2 + $0x3c8] sm:$0xf0]  ;;  %v2428_v4 = vld [vmem:[#allocation2 + $0x4] sm:$0xf]  ;;  %v245_v13 = vunpack.c.l.b16 %v38_v63  ;;  %v2047_v14 = vor.u32 %v2525_v61, %v2046_v58  ;;  %v246_v18 = vunpack.c.h.b16 %v38_v63 }
  0x31   :  { %1081 = vmatpush.bf16.msrb.mxu0 %v2107_v5  ;;  %v1664_v5 = vld [vmem:[#allocation2 + $0xc] sm:$0xf0]  ;;  %v2497_v7 = vld [vmem:[#allocation2 + $0x22c] sm:$0xf]  ;;  %v1940_v8 = vld [vmem:[#allocation2 + $0x234] sm:$0xf0] }
  0x32   :  { %1094 = vmatpush.bf16.msrb.mxu1 %v2203_v6  ;;  %v1775_v6 = vor.u32 %v2455_v56, %v1772_v57  ;;  %v2036_v10 = vld [vmem:[#allocation2 + $0x2f4] sm:$0xf0]  ;;  %v2545_v11 = vld [vmem:[#allocation2 + $0x3ac] sm:$0xf]  ;;  %v2452_v16 = vld [vmem:[#allocation2 + $0xc4] sm:$0xf]  ;;  %v1667_v19 = vor.u32 %v2428_v4, %v1664_v5  ;;  %v2729_v31 = vpack.c.b16 %v245_v13, %v245_v13  ;;  %v2731_v36 = vpack.c.b16 %v246_v18, %v246_v18 }
  0x33   :  { %1107 = vmatpush.bf16.msrb.mxu2 %v1727_v9  ;;  %v2521_v9 = vld [vmem:[#allocation2 + $0x2ec] sm:$0xf]  ;;  %v2132_v12 = vld [vmem:[#allocation2 + $0x3b4] sm:$0xf0]  ;;  %v1760_v17 = vld [vmem:[#allocation2 + $0xcc] sm:$0xf0] }
  0x34   :  { %1120 = vmatpush.bf16.msrb.mxu3 %v1823_v15  ;;  %v2143_v15 = vor.u32 %v2549_v3, %v2142_v62  ;;  %v2228_v24 = vld [vmem:[#allocation2 + $0x474] sm:$0xf0]  ;;  %v2135_v26 = vor.u32 %v2545_v11, %v2132_v12  ;;  %v2494_v27 = vld [vmem:[#allocation2 + $0x214] sm:$0xf]  ;;  %v1928_v28 = vld [vmem:[#allocation2 + $0x21c] sm:$0xf0]  ;;  %v1763_v30 = vor.u32 %v2452_v16, %v1760_v17 }
  0x35   :  { %1082 = vmatpush.bf16.msrb.mxu0 %v2095_v22  ;;  %v1943_v22 = vor.u32 %v2497_v7, %v1940_v8  ;;  %v2024_v32 = vld [vmem:[#allocation2 + $0x2dc] sm:$0xf0]  ;;  %v2542_v33 = vld [vmem:[#allocation2 + $0x394] sm:$0xf]  ;;  %v2491_v42 = vld [vmem:[#allocation2 + $0x1fc] sm:$0xf] }
  0x36   :  { %1095 = vmatpush.bf16.msrb.mxu1 %v2191_v23  ;;  %v2569_v23 = vld [vmem:[#allocation2 + $0x46c] sm:$0xf]  ;;  %v2566_v38 = vld [vmem:[#allocation2 + $0x454] sm:$0xf]  ;;  %v2216_v39 = vld [vmem:[#allocation2 + $0x45c] sm:$0xf0] }
  0x37   :  { %1108 = vmatpush.bf16.msrb.mxu2 %v1715_v25  ;;  %v2039_v25 = vor.u32 %v2521_v9, %v2036_v10  ;;  %v1916_v43 = vld [vmem:[#allocation2 + $0x204] sm:$0xf0]  ;;  %v2515_v44 = vld [vmem:[#allocation2 + $0x2bc] sm:$0xf]  ;;  %v2219_v48 = vor.u32 %v2566_v38, %v2216_v39  ;;  %v2488_v54 = vld [vmem:[#allocation2 + $0x1e4] sm:$0xf] }
  0x38   :  { %1121 = vmatpush.bf16.msrb.mxu3 %v1811_v29  ;;  %v2518_v29 = vld [vmem:[#allocation2 + $0x2d4] sm:$0xf]  ;;  %v2012_v45 = vld [vmem:[#allocation2 + $0x2c4] sm:$0xf0]  ;;  %v2563_v50 = vld [vmem:[#allocation2 + $0x43c] sm:$0xf] }
  0x39   :  { %1083 = vmatpush.bf16.msrb.mxu0 %v2083_v34  ;;  %v2120_v34 = vld [vmem:[#allocation2 + $0x39c] sm:$0xf0]  ;;  %v2027_v40 = vor.u32 %v2518_v29, %v2024_v32  ;;  %v2204_v51 = vld [vmem:[#allocation2 + $0x444] sm:$0xf0]  ;;  %v2015_v52 = vor.u32 %v2515_v44, %v2012_v45  ;;  %v1904_v55 = vld [vmem:[#allocation2 + $0x1ec] sm:$0xf0] }
  0x3a   :  { %1096 = vmatpush.bf16.msrb.mxu1 %v2179_v35  ;;  %v2231_v35 = vor.u32 %v2569_v23, %v2228_v24  ;;  %v2512_v56 = vld [vmem:[#allocation2 + $0x2a4] sm:$0xf]  ;;  %v2000_v57 = vld [vmem:[#allocation2 + $0x2ac] sm:$0xf0]  ;;  %v1907_v61 = vor.u32 %v2488_v54, %v1904_v55  ;;  %v2485_v4 = vld [vmem:[#allocation2 + $0x1cc] sm:$0xf] }
  0x3b   :  { %1109 = vmatpush.bf16.msrb.mxu2 %v1703_v37  ;;  %v1931_v37 = vor.u32 %v2494_v27, %v1928_v28  ;;  %v2536_v58 = vld [vmem:[#allocation2 + $0x364] sm:$0xf]  ;;  %v2192_v63 = vld [vmem:[#allocation2 + $0x42c] sm:$0xf0]  ;;  %v1892_v5 = vld [vmem:[#allocation2 + $0x1d4] sm:$0xf0] }
  0x3c   :  { %1122 = vmatpush.bf16.msrb.mxu3 %v1799_v41  ;;  %v2123_v41 = vor.u32 %v2542_v33, %v2120_v34  ;;  %v2560_v62 = vld [vmem:[#allocation2 + $0x424] sm:$0xf]  ;;  %v1988_v7 = vld [vmem:[#allocation2 + $0x294] sm:$0xf0]  ;;  %v2533_v8 = vld [vmem:[#allocation2 + $0x34c] sm:$0xf]  ;;  %v1895_v11 = vor.u32 %v2485_v4, %v1892_v5 }
  0x3d   :  { %1084 = vmatpush.bf16.msrb.mxu0 %v2071_v46  ;;  %v2539_v46 = vld [vmem:[#allocation2 + $0x37c] sm:$0xf]  ;;  %v2084_v9 = vld [vmem:[#allocation2 + $0x354] sm:$0xf0]  ;;  %v2195_v10 = vor.u32 %v2560_v62, %v2192_v63  ;;  %v2557_v12 = vld [vmem:[#allocation2 + $0x40c] sm:$0xf] }
  0x3e   :  { %1097 = vmatpush.bf16.msrb.mxu1 %v2167_v47  ;;  %v2108_v47 = vld [vmem:[#allocation2 + $0x384] sm:$0xf0]  ;;  %v2180_v13 = vld [vmem:[#allocation2 + $0x414] sm:$0xf0]  ;;  %v2482_v16 = vld [vmem:[#allocation2 + $0x1b4] sm:$0xf] }
  0x3f   :  { %1110 = vmatpush.bf16.msrb.mxu2 %v1691_v49  ;;  %v1919_v49 = vor.u32 %v2491_v42, %v1916_v43  ;;  %v1880_v17 = vld [vmem:[#allocation2 + $0x1bc] sm:$0xf0]  ;;  %v2506_v18 = vld [vmem:[#allocation2 + $0x274] sm:$0xf]  ;;  %v2183_v24 = vor.u32 %v2557_v12, %v2180_v13  ;;  %v1868_v32 = vld [vmem:[#allocation2 + $0x1a4] sm:$0xf0] }
  0x40   :  { %1123 = vmatpush.bf16.msrb.mxu3 %v1787_v53  ;;  %v2111_v53 = vor.u32 %v2539_v46, %v2108_v47  ;;  %v2072_v23 = vld [vmem:[#allocation2 + $0x33c] sm:$0xf0]  ;;  %v2503_v33 = vld [vmem:[#allocation2 + $0x25c] sm:$0xf]  ;;  %v1964_v34 = vld [vmem:[#allocation2 + $0x264] sm:$0xf0] }
  0x41   :  { %1085 = vmatpush.bf16.msrb.mxu0 %v2059_v59  ;;  %v2096_v59 = vld [vmem:[#allocation2 + $0x36c] sm:$0xf0]  ;;  %v2168_v27 = vld [vmem:[#allocation2 + $0x3fc] sm:$0xf0]  ;;  %v2476_v42 = vld [vmem:[#allocation2 + $0x184] sm:$0xf]  ;;  %v1967_v43 = vor.u32 %v2503_v33, %v1964_v34 }
  0x42   :  { %1098 = vmatpush.bf16.msrb.mxu1 %v2155_v60  ;;  %v2207_v60 = vor.u32 %v2563_v50, %v2204_v51  ;;  %v2099_v3 = vor.u32 %v2536_v58, %v2096_v59  ;;  %v1856_v45 = vld [vmem:[#allocation2 + $0x18c] sm:$0xf0]  ;;  %v2500_v46 = vld [vmem:[#allocation2 + $0x244] sm:$0xf]  ;;  %v2475_v54 = vld [vmem:[#allocation2 + $0x178] sm:$0xf0] }
  0x43   :  { %1111 = vmatpush.bf16.msrb.mxu2 %v1679_v0  ;;  %v2003_v0 = vor.u32 %v2512_v56, %v2000_v57  ;;  %v1952_v47 = vld [vmem:[#allocation2 + $0x24c] sm:$0xf0]  ;;  %v1859_v55 = vor.u32 %v2476_v42, %v1856_v45  ;;  %v2548_v56 = vld [vmem:[#allocation2 + $0x3c4] sm:$0xf]  ;;  %v2499_v63 = vld [vmem:[#allocation2 + $0x238] sm:$0xf0] }
  0x44   :  { %1124 = vmatpush.bf16.msrb.mxu3 %v1775_v6  ;;  %v2509_v6 = vld [vmem:[#allocation2 + $0x28c] sm:$0xf]  ;;  %v1754_v50 = vld [vmem:[#allocation2 + $0xb0] sm:$0xf]  ;;  %v1955_v58 = vor.u32 %v2500_v46, %v1952_v47  ;;  %v1742_v5 = vld [vmem:[#allocation2 + $0x98] sm:$0xf] }
  0x45   :  { %1086 = vmatpush.bf16.msrb.mxu0 %v2047_v14  ;;  %v1991_v14 = vor.u32 %v2509_v6, %v1988_v7  ;;  %v2144_v57 = vld [vmem:[#allocation2 + $0x3cc] sm:$0xf0]  ;;  %v2448_v6 = vld [vmem:[#allocation2 + $0xa0] sm:$0xf0]  ;;  %v1838_v7 = vld [vmem:[#allocation2 + $0x158] sm:$0xf] }
  0x46   :  { %1099 = vmatpush.bf16.msrb.mxu1 %v2143_v15  ;;  %v2087_v15 = vor.u32 %v2533_v8, %v2084_v9  ;;  %v2147_v4 = vor.u32 %v2548_v56, %v2144_v57  ;;  %v2472_v8 = vld [vmem:[#allocation2 + $0x160] sm:$0xf0]  ;;  %v1743_v12 = vor.u32 %v2448_v6, %v1742_v5  ;;  %v2442_v33 = vld [vmem:[#allocation2 + $0x70] sm:$0xf0]  ;;  %v1814_v34 = vld [vmem:[#allocation2 + $0x128] sm:$0xf] }
  0x47   :  { %1112 = vmatpush.bf16.msrb.mxu2 %v1667_v19  ;;  %v1976_v19 = vld [vmem:[#allocation2 + $0x27c] sm:$0xf0]  ;;  %v2496_v13 = vld [vmem:[#allocation2 + $0x220] sm:$0xf0]  ;;  %v2006_v42 = vld [vmem:[#allocation2 + $0x2a8] sm:$0xf] }
  0x48   :  { %1125 = vmatpush.bf16.msrb.mxu3 %v1763_v30  ;;  %1087 = vmatmul.bf16.vlgmr.msrb.gmra.mxu0 %v2729_v31  ;;  %v1979_v28 = vor.u32 %v2506_v18, %v1976_v19  ;;  %v2479_v30 = vld [vmem:[#allocation2 + $0x19c] sm:$0xf]  ;;  %v2445_v18 = vld [vmem:[#allocation2 + $0x88] sm:$0xf0]  ;;  %v1826_v19 = vld [vmem:[#allocation2 + $0x140] sm:$0xf] }
  0x49   :  { %1131 = vmatpush.bf16.msra.mxu0 %v1943_v22  ;;  %1100 = vmatmul.bf16.vlgmr.msrb.gmra.mxu1 %v2731_v36  ;;  %v2530_v22 = vld [vmem:[#allocation2 + $0x334] sm:$0xf]  ;;  %v1871_v39 = vor.u32 %v2479_v30, %v1868_v32  ;;  %v1718_v32 = vld [vmem:[#allocation2 + $0x68] sm:$0xf]  ;;  %v1706_v45 = vld [vmem:[#allocation2 + $0x50] sm:$0xf] }
  0x4a   :  { %1144 = vmatpush.bf16.msra.mxu1 %v2039_v25  ;;  %1113 = vmatmul.bf16.vlgmr.msrb.gmra.mxu2 %v2711_v1  ;;  %v1883_v25 = vor.u32 %v2482_v16, %v1880_v17  ;;  %v2075_v29 = vor.u32 %v2530_v22, %v2072_v23  ;;  %v1839_v16 = vor.u32 %v2472_v8, %v1838_v7  ;;  %v1730_v17 = vld [vmem:[#allocation2 + $0x80] sm:$0xf]  ;;  %v2469_v22 = vld [vmem:[#allocation2 + $0x148] sm:$0xf0]  ;;  %v2439_v46 = vld [vmem:[#allocation2 + $0x58] sm:$0xf0] }
  0x4b   :  { %1157 = vmatpush.bf16.msra.mxu2 %v2135_v26  ;;  %1126 = vmatmul.bf16.vlgmr.msrb.gmra.mxu3 %v2713_v2  ;;  %v2554_v26 = vld [vmem:[#allocation2 + $0x3f4] sm:$0xf]  ;;  %v1827_v30 = vor.u32 %v2469_v22, %v1826_v19  ;;  %v1802_v47 = vld [vmem:[#allocation2 + $0x110] sm:$0xf]  ;;  %v1694_v57 = vld [vmem:[#allocation2 + $0x38] sm:$0xf] }
  0x4c   :  { %1170 = vmatpush.bf16.msra.mxu3 %v2231_v35  ;;  %v2527_v35 = vld [vmem:[#allocation2 + $0x31c] sm:$0xf]  ;;  %v2171_v38 = vor.u32 %v2554_v26, %v2168_v27  ;;  %v1731_v26 = vor.u32 %v2445_v18, %v1730_v17  ;;  %v2493_v27 = vld [vmem:[#allocation2 + $0x208] sm:$0xf0]  ;;  %v2508_v5 = vld [vmem:[#allocation2 + $0x280] sm:$0xf0] }
  0x4d   :  { %1132 = vmatpush.bf16.msra.mxu0 %v1931_v37  ;;  %v2060_v37 = vld [vmem:[#allocation2 + $0x324] sm:$0xf0]  ;;  %v1682_v7 = vld [vmem:[#allocation2 + $0x20] sm:$0xf]  ;;  %v2433_v8 = vld [vmem:[#allocation2 + $0x28] sm:$0xf0] }
  0x4e   :  { %1145 = vmatpush.bf16.msra.mxu1 %v2027_v40  ;;  %v2551_v40 = vld [vmem:[#allocation2 + $0x3dc] sm:$0xf]  ;;  %v2063_v44 = vor.u32 %v2527_v35, %v2060_v37  ;;  %v2466_v35 = vld [vmem:[#allocation2 + $0x130] sm:$0xf0]  ;;  %v2505_v17 = vld [vmem:[#allocation2 + $0x268] sm:$0xf0] }
  0x4f   :  { %1158 = vmatpush.bf16.msra.mxu2 %v2123_v41  ;;  %v2156_v41 = vld [vmem:[#allocation2 + $0x3e4] sm:$0xf0]  ;;  %v2430_v22 = vld [vmem:[#allocation2 + $0x10] sm:$0xf0]  ;;  %vm1641_vm0 = vcmask 523264  }
  0x50   :  { %1171 = vmatpush.bf16.msra.mxu3 %v2219_v48  ;;  %v2524_v48 = vld [vmem:[#allocation2 + $0x304] sm:$0xf]  ;;  %v2159_v51 = vor.u32 %v2551_v40, %v2156_v41  ;;  %v1719_v40 = vor.u32 %v2442_v33, %v1718_v32  ;;  %v2490_v41 = vld [vmem:[#allocation2 + $0x1f0] sm:$0xf0]  ;;  %v1670_v19 = vld [vmem:[#allocation2 + $0x8] sm:$0xf] }
  0x51   :  { %1133 = vmatpush.bf16.msra.mxu0 %v1919_v49  ;;  %v2048_v49 = vld [vmem:[#allocation2 + $0x30c] sm:$0xf0]  ;;  %v1671_v32 = vor.u32 %v2430_v22, %v1670_v19  ;;  %v1862_v33 = vld [vmem:[#allocation2 + $0x188] sm:$0xf]  ;;  %v2066_v19 = vld [vmem:[#allocation2 + $0x320] sm:$0xf] }
  0x52   :  { %1146 = vmatpush.bf16.msra.mxu1 %v2015_v52  ;;  %v2451_v52 = vld [vmem:[#allocation2 + $0xb8] sm:$0xf0]  ;;  %v2051_v59 = vor.u32 %v2524_v48, %v2048_v49  ;;  %v2529_v22 = vld [vmem:[#allocation2 + $0x328] sm:$0xf0] }
  0x53   :  { %1159 = vmatpush.bf16.msra.mxu2 %v2111_v53  ;;  %v1850_v53 = vld [vmem:[#allocation2 + $0x170] sm:$0xf]  ;;  %v2463_v48 = vld [vmem:[#allocation2 + $0x118] sm:$0xf0] }
  0x54   :  { %1172 = vmatpush.bf16.msra.mxu3 %v2207_v60  ;;  %v1946_v60 = vld [vmem:[#allocation2 + $0x230] sm:$0xf]  ;;  %v1851_v62 = vor.u32 %v2475_v54, %v1850_v53  ;;  %v2487_v53 = vld [vmem:[#allocation2 + $0x1d8] sm:$0xf0]  ;;  %v1803_v56 = vor.u32 %v2463_v48, %v1802_v47  ;;  %v2114_v48 = vld [vmem:[#allocation2 + $0x380] sm:$0xf] }
  0x55   :  { %1134 = vmatpush.bf16.msra.mxu0 %v1907_v61  ;;  %v1755_v61 = vor.u32 %v2451_v52, %v1754_v50  ;;  %v1947_v9 = vor.u32 %v2499_v63, %v1946_v60  ;;  %v1707_v52 = vor.u32 %v2439_v46, %v1706_v45  ;;  %v1994_v54 = vld [vmem:[#allocation2 + $0x290] sm:$0xf]  ;;  %v2460_v60 = vld [vmem:[#allocation2 + $0x100] sm:$0xf0]  ;;  %v1886_v63 = vld [vmem:[#allocation2 + $0x1b8] sm:$0xf] }
  0x56   :  { %1147 = vmatpush.bf16.msra.mxu1 %v2003_v0  ;;  %v2042_v0 = vld [vmem:[#allocation2 + $0x2f0] sm:$0xf] }
  0x57   :  { %1160 = vmatpush.bf16.msra.mxu2 %v2099_v3  ;;  %v2523_v3 = vld [vmem:[#allocation2 + $0x2f8] sm:$0xf0] }
  0x58   :  { %1173 = vmatpush.bf16.msra.mxu3 %v2195_v10  ;;  %v2043_v10 = vor.u32 %v2523_v3, %v2042_v0  ;;  %v2484_v3 = vld [vmem:[#allocation2 + $0x1c0] sm:$0xf0] }
  0x59   :  { %1135 = vmatpush.bf16.msra.mxu0 %v1895_v11  ;;  %v1934_v11 = vld [vmem:[#allocation2 + $0x218] sm:$0xf] }
  0x5a   :  { %1148 = vmatpush.bf16.msra.mxu1 %v1991_v14  ;;  %v2030_v14 = vld [vmem:[#allocation2 + $0x2d8] sm:$0xf]  ;;  %v1935_v23 = vor.u32 %v2496_v13, %v1934_v11  ;;  %v1887_v11 = vor.u32 %v2484_v3, %v1886_v63  ;;  %v1874_v13 = vld [vmem:[#allocation2 + $0x1a0] sm:$0xf]  ;;  %v2198_v63 = vld [vmem:[#allocation2 + $0x428] sm:$0xf] }
  0x5b   :  { %1161 = vmatpush.bf16.msra.mxu2 %v2087_v15  ;;  %v2520_v15 = vld [vmem:[#allocation2 + $0x2e0] sm:$0xf0]  ;;  %v2090_v3 = vld [vmem:[#allocation2 + $0x350] sm:$0xf] }
  0x5c   :  { %1174 = vmatpush.bf16.msra.mxu3 %v2183_v24  ;;  %v2031_v24 = vor.u32 %v2520_v15, %v2030_v14  ;;  %v1683_v14 = vor.u32 %v2433_v8, %v1682_v7  ;;  %v2481_v15 = vld [vmem:[#allocation2 + $0x1a8] sm:$0xf0]  ;;  %v2078_v8 = vld [vmem:[#allocation2 + $0x338] sm:$0xf] }
  0x5d   :  { %1136 = vmatpush.bf16.msra.mxu0 %v1883_v25  ;;  %v1922_v25 = vld [vmem:[#allocation2 + $0x200] sm:$0xf] }
  0x5e   :  { %1149 = vmatpush.bf16.msra.mxu1 %v1979_v28  ;;  %v2018_v28 = vld [vmem:[#allocation2 + $0x2c0] sm:$0xf]  ;;  %v1923_v37 = vor.u32 %v2493_v27, %v1922_v25  ;;  %v2138_v25 = vld [vmem:[#allocation2 + $0x3b0] sm:$0xf] }
  0x5f   :  { %1162 = vmatpush.bf16.msra.mxu2 %v2075_v29  ;;  %v2517_v29 = vld [vmem:[#allocation2 + $0x2c8] sm:$0xf0]  ;;  %v2234_v27 = vld [vmem:[#allocation2 + $0x470] sm:$0xf] }
  0x60   :  { %1175 = vmatpush.bf16.msra.mxu3 %v2171_v38  ;;  %v2019_v38 = vor.u32 %v2517_v29, %v2018_v28  ;;  %v2571_v28 = vld [vmem:[#allocation2 + $0x478] sm:$0xf0]  ;;  %v1875_v29 = vor.u32 %v2481_v15, %v1874_v13  ;;  %v2581_v15 = vld [vmem:[%s3051_s2 + $0x44] sm:$0xf0] }
  0x61   :  { %1137 = vmatpush.bf16.msra.mxu0 %v1871_v39  ;;  %v1910_v39 = vld [vmem:[#allocation2 + $0x1e8] sm:$0xf] }
  0x62   :  { %1150 = vmatpush.bf16.msra.mxu1 %v1967_v43  ;;  %v2514_v43 = vld [vmem:[#allocation2 + $0x2b0] sm:$0xf0]  ;;  %v1911_v49 = vor.u32 %v2490_v41, %v1910_v39  ;;  %v2126_v41 = vld [vmem:[#allocation2 + $0x398] sm:$0xf] }
  0x63   :  { %1163 = vmatpush.bf16.msra.mxu2 %v2063_v44  ;;  %v1815_v44 = vor.u32 %v2466_v35, %v1814_v34  ;;  %v2007_v50 = vor.u32 %v2514_v43, %v2006_v42  ;;  %v2478_v34 = vld [vmem:[#allocation2 + $0x190] sm:$0xf0]  ;;  %v2544_v42 = vld [vmem:[#allocation2 + $0x3a0] sm:$0xf0]  ;;  %v2222_v43 = vld [vmem:[#allocation2 + $0x458] sm:$0xf] }
  0x64   :  { %1176 = vmatpush.bf16.msra.mxu3 %v2159_v51  ;;  %v1898_v51 = vld [vmem:[#allocation2 + $0x1d0] sm:$0xf]  ;;  %v2502_v39 = vld [vmem:[#allocation2 + $0x250] sm:$0xf0]  ;;  %v1863_v45 = vor.u32 %v2478_v34, %v1862_v33  ;;  %v2127_v47 = vor.u32 %v2544_v42, %v2126_v41  ;;  %v2150_v33 = vld [vmem:[#allocation2 + $0x3c8] sm:$0xf] }
  0x65   :  { %1138 = vmatpush.bf16.msra.mxu0 %v1859_v55  ;;  %v2511_v55 = vld [vmem:[#allocation2 + $0x298] sm:$0xf0]  ;;  %v2550_v34 = vld [vmem:[#allocation2 + $0x3d0] sm:$0xf0] }
  0x66   :  { %1151 = vmatpush.bf16.msra.mxu1 %v1955_v58  ;;  %v2436_v58 = vld [vmem:[#allocation2 + $0x40] sm:$0xf0]  ;;  %v2151_v41 = vor.u32 %v2550_v34, %v2150_v33  ;;  %v2597_v33 = vld [vmem:[%s3051_s2 + $0xc4] sm:$0xf0] }
  0x67   :  { %1164 = vmatpush.bf16.msra.mxu2 %v2051_v59  ;;  %v1790_v59 = vld [vmem:[#allocation2 + $0xf8] sm:$0xf]  ;;  %v1695_v0 = vor.u32 %v2436_v58, %v1694_v57  ;;  %v2565_v57 = vld [vmem:[#allocation2 + $0x448] sm:$0xf0] }
  0x68   :  { %1177 = vmatpush.bf16.msra.mxu3 %v2147_v4  ;;  %1139 = vmatmul.bf16.vlgmr.msra.gmra.mxu0 %v2720_v20  ;;  %v1982_v4 = vld [vmem:[#allocation2 + $0x278] sm:$0xf]  ;;  %v1791_v6 = vor.u32 %v2460_v60, %v1790_v59 }
  0x69   :  { %1183 = vmatpush.bf16.msrb.mxu0 %v1755_v61  ;;  %1152 = vmatmul.bf16.vlgmr.msra.gmra.mxu1 %v2722_v21  ;;  %v1899_v61 = vor.u32 %v2487_v53, %v1898_v51 }
  0x6a   :  { %1196 = vmatpush.bf16.msrb.mxu1 %v1851_v62  ;;  %1165 = vmatmul.bf16.vlgmr.msra.gmra.mxu2 %v2729_v31  ;;  %v1995_v62 = vor.u32 %v2511_v55, %v1994_v54  ;;  %v2286_v54 = vld [vmem:[%s3051_s2 + $0x60] sm:$0xf]  ;;  %v2585_v55 = vld [vmem:[%s3051_s2 + $0x64] sm:$0xf0] }
  0x6b   :  { %1209 = vmatpush.bf16.msrb.mxu2 %v1947_v9  ;;  %1178 = vmatmul.bf16.vlgmr.msra.gmra.mxu3 %v2731_v36  ;;  %v1778_v9 = vld [vmem:[#allocation2 + $0xe0] sm:$0xf]  ;;  %v2287_v59 = vor.u32 %v2585_v55, %v2286_v54  ;;  %v2578_v54 = vld [vmem:[%s3051_s2 + $0x34] sm:$0xf]  ;;  %v2264_v55 = vld [vmem:[%s3051_s2 + $0x38] sm:$0xf0] }
  0x6c   :  { %1222 = vmatpush.bf16.msrb.mxu3 %v2043_v10  ;;  %v2457_v10 = vld [vmem:[#allocation2 + $0xe8] sm:$0xf0] }
  0x6d   :  { %1184 = vmatpush.bf16.msrb.mxu0 %v1743_v12  ;;  %v1983_v12 = vor.u32 %v2508_v5, %v1982_v4  ;;  %v1779_v18 = vor.u32 %v2457_v10, %v1778_v9  ;;  %v2535_v4 = vld [vmem:[#allocation2 + $0x358] sm:$0xf0]  ;;  %v2186_v5 = vld [vmem:[#allocation2 + $0x410] sm:$0xf]  ;;  %v2532_v9 = vld [vmem:[#allocation2 + $0x340] sm:$0xf0] }
  0x6e   :  { %1197 = vmatpush.bf16.msrb.mxu1 %v1839_v16  ;;  %v1970_v16 = vld [vmem:[#allocation2 + $0x260] sm:$0xf]  ;;  %v2091_v7 = vor.u32 %v2535_v4, %v2090_v3  ;;  %v2603_v3 = vld [vmem:[%s3051_s2 + $0xf4] sm:$0xf0]  ;;  %v2602_v4 = vld [vmem:[%s3051_s2 + $0xf4] sm:$0xf] }
  0x6f   :  { %1210 = vmatpush.bf16.msrb.mxu2 %v1935_v23  ;;  %v1766_v23 = vld [vmem:[#allocation2 + $0xc8] sm:$0xf] }
  0x70   :  { %1223 = vmatpush.bf16.msrb.mxu3 %v2031_v24  ;;  %v2454_v24 = vld [vmem:[#allocation2 + $0xd0] sm:$0xf0] }
  0x71   :  { %1185 = vmatpush.bf16.msrb.mxu0 %v1731_v26  ;;  %v2547_v26 = vld [vmem:[#allocation2 + $0x3b8] sm:$0xf0]  ;;  %v1767_v35 = vor.u32 %v2454_v24, %v1766_v23  ;;  %v2162_v23 = vld [vmem:[#allocation2 + $0x3e0] sm:$0xf]  ;;  %v2553_v24 = vld [vmem:[#allocation2 + $0x3e8] sm:$0xf0] }
  0x72   :  { %1198 = vmatpush.bf16.msrb.mxu1 %v1827_v30  ;;  %v1971_v30 = vor.u32 %v2505_v17, %v1970_v16  ;;  %v2079_v16 = vor.u32 %v2532_v9, %v2078_v8  ;;  %v2350_v8 = vld [vmem:[%s3051_s2 + $0xe0] sm:$0xf]  ;;  %v2601_v9 = vld [vmem:[%s3051_s2 + $0xe4] sm:$0xf0] }
  0x73   :  { %1211 = vmatpush.bf16.msrb.mxu2 %v1923_v37  ;;  %v2139_v37 = vor.u32 %v2547_v26, %v2138_v25  ;;  %v2262_v25 = vld [vmem:[%s3051_s2 + $0x30] sm:$0xf]  ;;  %v2579_v26 = vld [vmem:[%s3051_s2 + $0x34] sm:$0xf0] }
  0x74   :  { %1224 = vmatpush.bf16.msrb.mxu3 %v2019_v38  ;;  %v1958_v38 = vld [vmem:[#allocation2 + $0x248] sm:$0xf] }
  0x75   :  { %1186 = vmatpush.bf16.msrb.mxu0 %v1719_v40  ;;  %v2235_v40 = vor.u32 %v2571_v28, %v2234_v27  ;;  %v1959_v46 = vor.u32 %v2502_v39, %v1958_v38  ;;  %v2067_v27 = vor.u32 %v2529_v22, %v2066_v19  ;;  %v2263_v28 = vor.u32 %v2579_v26, %v2262_v25  ;;  %v2254_v39 = vld [vmem:[%s3051_s2 + $0x20] sm:$0xf]  ;;  %v2598_v19 = vld [vmem:[%s3051_s2 + $0xd4] sm:$0xf]  ;;  %v2344_v22 = vld [vmem:[%s3051_s2 + $0xd8] sm:$0xf0] }
  0x76   :  { %1199 = vmatpush.bf16.msrb.mxu1 %v1815_v44  ;;  %v2568_v44 = vld [vmem:[#allocation2 + $0x460] sm:$0xf0]  ;;  %v2240_v25 = vld [vmem:[%s3051_s2 + $0x8] sm:$0xf0] }
  0x77   :  { %1212 = vmatpush.bf16.msrb.mxu2 %v1911_v49  ;;  %v2294_v49 = vld [vmem:[%s3051_s2 + $0x70] sm:$0xf]  ;;  %v2223_v51 = vor.u32 %v2568_v44, %v2222_v43  ;;  %v2584_v44 = vld [vmem:[%s3051_s2 + $0x64] sm:$0xf] }
  0x78   :  { %1225 = vmatpush.bf16.msrb.mxu3 %v2007_v50  ;;  %v2587_v50 = vld [vmem:[%s3051_s2 + $0x74] sm:$0xf0] }
  0x79   :  { %1187 = vmatpush.bf16.msrb.mxu0 %v1707_v52  ;;  %v2541_v52 = vld [vmem:[#allocation2 + $0x388] sm:$0xf0]  ;;  %v2295_v53 = vor.u32 %v2587_v50, %v2294_v49  ;;  %v2580_v50 = vld [vmem:[%s3051_s2 + $0x44] sm:$0xf] }
  0x7a   :  { %1200 = vmatpush.bf16.msrb.mxu1 %v1803_v56  ;;  %v2210_v56 = vld [vmem:[#allocation2 + $0x440] sm:$0xf]  ;;  %v2115_v58 = vor.u32 %v2541_v52, %v2114_v48  ;;  %v2280_v48 = vld [vmem:[%s3051_s2 + $0x58] sm:$0xf0]  ;;  %v2575_v52 = vld [vmem:[%s3051_s2 + $0x14] sm:$0xf0] }
  0x7b   :  { %1213 = vmatpush.bf16.msrb.mxu2 %v1899_v61  ;;  %v2211_v60 = vor.u32 %v2565_v57, %v2210_v56  ;;  %v2102_v61 = vld [vmem:[#allocation2 + $0x368] sm:$0xf]  ;;  %v2238_v56 = vld [vmem:[%s3051_s2] sm:$0xf] }
  0x7c   :  { %1226 = vmatpush.bf16.msrb.mxu3 %v1995_v62  ;;  %v2538_v62 = vld [vmem:[#allocation2 + $0x370] sm:$0xf0]  ;;  %v2573_v57 = vld [vmem:[%s3051_s2 + $0x4] sm:$0xf0] }
  0x7d   :  { %1188 = vmatpush.bf16.msrb.mxu0 %v1695_v0  ;;  %v2562_v0 = vld [vmem:[#allocation2 + $0x430] sm:$0xf0] }
  0x7e   :  { %1201 = vmatpush.bf16.msrb.mxu1 %v1791_v6  ;;  %v2559_v6 = vld [vmem:[#allocation2 + $0x418] sm:$0xf0] }
  0x7f   :  { %1214 = vmatpush.bf16.msrb.mxu2 %v1887_v11  ;;  %v2187_v10 = vor.u32 %v2559_v6, %v2186_v5  ;;  %v2583_v11 = vld [vmem:[%s3051_s2 + $0x54] sm:$0xf0] }
  0x80   :  { %1227 = vmatpush.bf16.msrb.mxu3 %v1983_v12  ;;  %v2556_v12 = vld [vmem:[#allocation2 + $0x400] sm:$0xf0] }
  0x81   :  { %1189 = vmatpush.bf16.msrb.mxu0 %v1683_v14  ;;  %v2270_v14 = vld [vmem:[%s3051_s2 + $0x40] sm:$0xf] }
  0x82   :  { %1202 = vmatpush.bf16.msrb.mxu1 %v1779_v18  ;;  %v2271_v17 = vor.u32 %v2581_v15, %v2270_v14  ;;  %v2342_v15 = vld [vmem:[%s3051_s2 + $0xd0] sm:$0xf] }
  0x83   :  { %1215 = vmatpush.bf16.msrb.mxu2 %v1875_v29  ;;  %v2163_v29 = vor.u32 %v2553_v24, %v2162_v23  ;;  %v2572_v24 = vld [vmem:[%s3051_s2 + $0x4] sm:$0xf] }
  0x84   :  { %1228 = vmatpush.bf16.msrb.mxu3 %v1971_v30  ;;  %v2054_v30 = vld [vmem:[#allocation2 + $0x308] sm:$0xf]  ;;  %v2243_v34 = vor.u32 %v2572_v24, %v2240_v25  ;;  %v2618_v24 = vld [vmem:[%s3051_s2 + $0x174] sm:$0xf] }
  0x85   :  { %1190 = vmatpush.bf16.msrb.mxu0 %v1671_v32  ;;  %v2526_v32 = vld [vmem:[#allocation2 + $0x310] sm:$0xf0] }
  0x86   :  { %1203 = vmatpush.bf16.msrb.mxu1 %v1767_v35  ;;  %v2586_v35 = vld [vmem:[%s3051_s2 + $0x74] sm:$0xf]  ;;  %v2055_v38 = vor.u32 %v2526_v32, %v2054_v30  ;;  %v2347_v30 = vor.u32 %v2598_v19, %v2344_v22  ;;  %v2334_v32 = vld [vmem:[%s3051_s2 + $0xc0] sm:$0xf]  ;;  %v2422_v22 = vld [vmem:[%s3051_s2 + $0x170] sm:$0xf] }
  0x87   :  { %1216 = vmatpush.bf16.msrb.mxu2 %v1863_v45  ;;  %v2288_v45 = vld [vmem:[%s3051_s2 + $0x68] sm:$0xf0] }
  0x88   :  { %1191 = vmatmul.bf16.vlgmr.msrb.gmra.mxu0 %v2711_v1  ;;  %1229 = vmatpush.bf16.msrb.mxu3 %v1959_v46  ;;  %v2103_v1 = vor.u32 %v2538_v62, %v2102_v61  ;;  %v2291_v46 = vor.u32 %v2584_v44, %v2288_v45  ;;  %v2576_v62 = vld [vmem:[%s3051_s2 + $0x24] sm:$0xf]  ;;  %v2328_v44 = vld [vmem:[%s3051_s2 + $0xb8] sm:$0xf0] }
  0x89   :  { %1235 = vmatpush.bf16.msra.mxu0 %v2139_v37  ;;  %1204 = vmatmul.bf16.vlgmr.msrb.gmra.mxu1 %v2713_v2  ;;  %v2199_v2 = vor.u32 %v2562_v0, %v2198_v63  ;;  %v2296_v37 = vld [vmem:[%s3051_s2 + $0x78] sm:$0xf0]  ;;  %v2256_v63 = vld [vmem:[%s3051_s2 + $0x28] sm:$0xf0]  ;;  %v2834_v0 = vld [vmem:[%s3052_s3] sm:$0x7] }
  0x8a   :  { %1248 = vmatpush.bf16.msra.mxu1 %v2235_v40  ;;  %1217 = vmatmul.bf16.vlgmr.msrb.gmra.mxu2 %v2720_v20  ;;  %v2174_v20 = vld [vmem:[#allocation2 + $0x3f8] sm:$0xf]  ;;  %v2577_v40 = vld [vmem:[%s3051_s2 + $0x24] sm:$0xf0]  ;;  %v2299_v43 = vor.u32 %v2586_v35, %v2296_v37  ;;  %v2259_v5 = vor.u32 %v2576_v62, %v2256_v63  ;;  %v2596_v35 = vld [vmem:[%s3051_s2 + $0xc4] sm:$0xf] }
  0x8b   :  { %1560 = vmatpush.bf16.msra.mxu2 %v2295_v53  ;;  %1230 = vmatmul.bf16.vlgmr.msrb.gmra.mxu3 %v2722_v21  ;;  %v2278_v21 = vld [vmem:[%s3051_s2 + $0x50] sm:$0xf]  ;;  %v2175_v18 = vor.u32 %v2556_v12, %v2174_v20  ;;  %v2255_v42 = vor.u32 %v2577_v40, %v2254_v39  ;;  %v2351_v12 = vor.u32 %v2601_v9, %v2350_v8  ;;  %v2336_v37 = vld [vmem:[%s3051_s2 + $0xc8] sm:$0xf0]  ;;  %v2588_v8 = vld [vmem:[%s3051_s2 + $0x84] sm:$0xf] }
  0x8c   :  { %v2279_v13 = vor.u32 %v2583_v11, %v2278_v21  ;;  %v2600_v21 = vld [vmem:[%s3051_s2 + $0xe4] sm:$0xf]  ;;  %v2352_v11 = vld [vmem:[%s3051_s2 + $0xe8] sm:$0xf0]  ;;  %v2339_v40 = vor.u32 %v2596_v35, %v2336_v37 }
  0x8d   :  { %1236 = vmatpush.bf16.msra.mxu0 %v2127_v47  ;;  %v2582_v47 = vld [vmem:[%s3051_s2 + $0x54] sm:$0xf]  ;;  %v2355_v14 = vor.u32 %v2600_v21, %v2352_v11 }
  0x8e   :  { %1249 = vmatpush.bf16.msra.mxu1 %v2223_v51  ;;  %v2283_v49 = vor.u32 %v2582_v47, %v2280_v48  ;;  %v2246_v51 = vld [vmem:[%s3051_s2 + $0x10] sm:$0xf] }
  0x8f   :  { %1561 = vmatpush.bf16.msra.mxu2 %v2287_v59  ;;  %v2247_v53 = vor.u32 %v2575_v52, %v2246_v51  ;;  %v2267_v59 = vor.u32 %v2578_v54, %v2264_v55  ;;  %v2318_v51 = vld [vmem:[%s3051_s2 + $0xa0] sm:$0xf]  ;;  %v2593_v52 = vld [vmem:[%s3051_s2 + $0xa4] sm:$0xf0] }
  0x90   :  { %v2319_v55 = vor.u32 %v2593_v52, %v2318_v51  ;;  %v2400_v51 = vld [vmem:[%s3051_s2 + $0x148] sm:$0xf0] }
  0x91   :  { %1237 = vmatpush.bf16.msra.mxu0 %v2115_v58 }
  0x92   :  { %1250 = vmatpush.bf16.msra.mxu1 %v2211_v60  ;;  %v2239_v60 = vor.u32 %v2573_v57, %v2238_v56  ;;  %v2320_v56 = vld [vmem:[%s3051_s2 + $0xa8] sm:$0xf0] }
  0x93   :  { %1562 = vmatpush.bf16.msra.mxu2 %v2279_v13  ;;  %v232_v13 = vperm.slane %v2834_v0, 0 }
  0x95   :  { %1238 = vmatpush.bf16.msra.mxu0 %v2103_v1  ;;  %v2574_v1 = vld [vmem:[%s3051_s2 + $0x14] sm:$0xf] }
  0x96   :  { %1251 = vmatpush.bf16.msra.mxu1 %v2199_v2  ;;  %v2358_v2 = vld [vmem:[%s3051_s2 + $0xf0] sm:$0xf] }
  0x97   :  { %1563 = vmatpush.bf16.msra.mxu2 %v2271_v17  ;;  %v2359_v6 = vor.u32 %v2603_v3, %v2358_v2 }
  0x99   :  { %1239 = vmatpush.bf16.msra.mxu0 %v2091_v7  ;;  %v2360_v7 = vld [vmem:[%s3051_s2 + $0xf8] sm:$0xf0]  ;;  %1573 = vmatpush.bf16.msra.mxu3 %v2359_v6  ;;  %v2302_v6 = vld [vmem:[%s3051_s2 + $0x80] sm:$0xf] }
  0x9a   :  { %1252 = vmatpush.bf16.msra.mxu1 %v2187_v10  ;;  %v2248_v10 = vld [vmem:[%s3051_s2 + $0x18] sm:$0xf0]  ;;  %v2363_v20 = vor.u32 %v2602_v4, %v2360_v7  ;;  %v2589_v7 = vld [vmem:[%s3051_s2 + $0x84] sm:$0xf0] }
  0x9b   :  { %1564 = vmatpush.bf16.msra.mxu2 %v2263_v28 }
  0x9d   :  { %1240 = vmatpush.bf16.msra.mxu0 %v2079_v16  ;;  %v2599_v16 = vld [vmem:[%s3051_s2 + $0xd4] sm:$0xf0]  ;;  %1574 = vmatpush.bf16.msra.mxu3 %v2351_v12 }
  0x9e   :  { %1253 = vmatpush.bf16.msra.mxu1 %v2175_v18  ;;  %v2251_v18 = vor.u32 %v2574_v1, %v2248_v10  ;;  %v2312_v1 = vld [vmem:[%s3051_s2 + $0x98] sm:$0xf0]  ;;  %v2303_v10 = vor.u32 %v2589_v7, %v2302_v6  ;;  %v2374_v6 = vld [vmem:[%s3051_s2 + $0x110] sm:$0xf]  ;;  %v2607_v7 = vld [vmem:[%s3051_s2 + $0x114] sm:$0xf0] }
  0x9f   :  { %1565 = vmatpush.bf16.msra.mxu2 %v2255_v42  ;;  %v2595_v42 = vld [vmem:[%s3051_s2 + $0xb4] sm:$0xf0] }
  0xa1   :  { %1241 = vmatpush.bf16.msra.mxu0 %v2067_v27  ;;  %v2343_v27 = vor.u32 %v2599_v16, %v2342_v15 }
  0xa2   :  { %1254 = vmatpush.bf16.msra.mxu1 %v2163_v29 }
  0xa3   :  { %1566 = vmatpush.bf16.msra.mxu2 %v2247_v53  ;;  %1575 = vmatpush.bf16.msra.mxu3 %v2343_v27  ;;  %v2414_v27 = vld [vmem:[%s3051_s2 + $0x160] sm:$0xf] }
  0xa5   :  { %1242 = vmatpush.bf16.msra.mxu0 %v2055_v38  ;;  %v1036_v58 = vpop.f32.mrf.mxu0  ;;  %v2335_v38 = vor.u32 %v2597_v33, %v2334_v32  ;;  %v2416_v32 = vld [vmem:[%s3051_s2 + $0x168] sm:$0xf0] }
  0xa6   :  { %1255 = vmatpush.bf16.msra.mxu1 %v2151_v41  ;;  %v1049_v61 = vpop.f32.mrf.mxu1  ;;  %v1037_v28 = vadd.f32 %v1036_v58, %v232_v13  ;;  %v2326_v41 = vld [vmem:[%s3051_s2 + $0xb0] sm:$0xf]  ;;  %v233_v13 = vperm.slane %v2834_v0, 1 }
  0xa7   :  { %1567 = vmatpush.bf16.msra.mxu2 %v2239_v60  ;;  %1576 = vmatpush.bf16.msra.mxu3 %v2335_v38  ;;  %v2591_v60 = vld [vmem:[%s3051_s2 + $0x94] sm:$0xf0]  ;;  %v2406_v38 = vld [vmem:[%s3051_s2 + $0x150] sm:$0xf] }
  0xa8   :  { %1243 = vmatmul.bf16.vlgmr.msra.gmra.mxu0 %v2729_v31  ;;  %v2272_v31 = vld [vmem:[%s3051_s2 + $0x48] sm:$0xf0]  ;;  %v1050_v39 = vadd.f32 %v1049_v61, %v1037_v28  ;;  %v2590_v61 = vld [vmem:[%s3051_s2 + $0x94] sm:$0xf]  ;;  %v2617_v28 = vld [vmem:[%s3051_s2 + $0x164] sm:$0xf0] }
  0xa9   :  { %1256 = vmatmul.bf16.vlgmr.msra.gmra.mxu1 %v2731_v36  ;;  %v2275_v36 = vor.u32 %v2580_v50, %v2272_v31  ;;  %v2315_v2 = vor.u32 %v2590_v61, %v2312_v1  ;;  %v2609_v1 = vld [vmem:[%s3051_s2 + $0x124] sm:$0xf0] }
  0xaa   :  { %1599 = vmatpush.bf16.msrb.mxu1 %v2299_v43  ;;  %v2594_v43 = vld [vmem:[%s3051_s2 + $0xb4] sm:$0xf] }
  0xab   :  { %1612 = vmatpush.bf16.msrb.mxu2 %v2363_v20  ;;  %v2304_v20 = vld [vmem:[%s3051_s2 + $0x88] sm:$0xf0] }
  0xac   :  { %v2307_v11 = vor.u32 %v2588_v8, %v2304_v20  ;;  %v2606_v8 = vld [vmem:[%s3051_s2 + $0x114] sm:$0xf] }
  0xad   :  { %v1038_v17 = vpop.f32.mrf.mxu0  ;;  %v1062_v29 = vpop.f32.mrf.mxu2 }
  0xae   :  { %1600 = vmatpush.bf16.msrb.mxu1 %v2291_v46  ;;  %v1051_v23 = vpop.f32.mrf.mxu1  ;;  %v1075_v26 = vpop.f32.mrf.mxu3  ;;  %v2327_v46 = vor.u32 %v2595_v42, %v2326_v41  ;;  %v1063_v47 = vadd.f32 %v1062_v29, %v1050_v39  ;;  %v2615_v39 = vld [vmem:[%s3051_s2 + $0x154] sm:$0xf0] }
  0xaf   :  { %1613 = vmatpush.bf16.msrb.mxu2 %v2355_v14  ;;  %v2619_v23 = vld [vmem:[%s3051_s2 + $0x174] sm:$0xf0] }
  0xb0   :  { %1577 = vmatpush.bf16.msra.mxu3 %v2327_v46  ;;  %v1076_v50 = vadd.f32 %v1075_v26, %v1063_v47  ;;  %v2423_v25 = vor.u32 %v2619_v23, %v2422_v22  ;;  %v2424_v26 = vld [vmem:[%s3051_s2 + $0x178] sm:$0xf0] }
  0xb1   :  { %v2427_v29 = vor.u32 %v2618_v24, %v2424_v26  ;;  %v234_v24 = vperm.slane %v2834_v0, 2 }
  0xb2   :  { %1601 = vmatpush.bf16.msrb.mxu1 %v2283_v49  ;;  %v2331_v49 = vor.u32 %v2594_v43, %v2328_v44  ;;  %1586 = vmatpush.bf16.msrb.mxu0 %v2423_v25  ;;  %v2407_v43 = vor.u32 %v2615_v39, %v2406_v38  ;;  %v2408_v44 = vld [vmem:[%s3051_s2 + $0x158] sm:$0xf0] }
  0xb3   :  { %1614 = vmatpush.bf16.msrb.mxu2 %v2347_v30  ;;  %v2616_v30 = vld [vmem:[%s3051_s2 + $0x164] sm:$0xf] }
  0xb4   :  { %1578 = vmatpush.bf16.msra.mxu3 %v2319_v55  ;;  %v2419_v35 = vor.u32 %v2616_v30, %v2416_v32 }
  0xb5   :  { %v1064_v48 = vpop.f32.mrf.mxu2 }
  0xb6   :  { %1602 = vmatpush.bf16.msrb.mxu1 %v2275_v36  ;;  %v1077_v45 = vpop.f32.mrf.mxu3  ;;  %v2592_v36 = vld [vmem:[%s3051_s2 + $0xa4] sm:$0xf] }
  0xb7   :  { %1615 = vmatpush.bf16.msrb.mxu2 %v2339_v40  ;;  %v2323_v57 = vor.u32 %v2592_v36, %v2320_v56  ;;  %v2614_v40 = vld [vmem:[%s3051_s2 + $0x154] sm:$0xf]  ;;  %v2611_v56 = vld [vmem:[%s3051_s2 + $0x134] sm:$0xf0] }
  0xb8   :  { %v2411_v47 = vor.u32 %v2614_v40, %v2408_v44 }
  0xba   :  { %1603 = vmatpush.bf16.msrb.mxu1 %v2267_v59  ;;  %v2310_v59 = vld [vmem:[%s3051_s2 + $0x90] sm:$0xf] }
  0xbb   :  { %1616 = vmatpush.bf16.msrb.mxu2 %v2331_v49  ;;  %v2311_v63 = vor.u32 %v2591_v60, %v2310_v59  ;;  %v2398_v49 = vld [vmem:[%s3051_s2 + $0x140] sm:$0xf] }
  0xbd   :  { %1579 = vmatpush.bf16.msra.mxu3 %v2311_v63  ;;  %v2382_v63 = vld [vmem:[%s3051_s2 + $0x120] sm:$0xf] }
  0xbe   :  { %1604 = vmatpush.bf16.msrb.mxu1 %v2259_v5 }
  0xbf   :  { %1617 = vmatpush.bf16.msrb.mxu2 %v2323_v57  ;;  %v2610_v57 = vld [vmem:[%s3051_s2 + $0x134] sm:$0xf] }
  0xc1   :  { %1580 = vmatpush.bf16.msra.mxu3 %v2303_v10  ;;  %v2376_v10 = vld [vmem:[%s3051_s2 + $0x118] sm:$0xf0] }
  0xc2   :  { %1605 = vmatpush.bf16.msrb.mxu1 %v2251_v18  ;;  %v2379_v20 = vor.u32 %v2606_v8, %v2376_v10 }
  0xc3   :  { %1618 = vmatpush.bf16.msrb.mxu2 %v2315_v2  ;;  %v2608_v2 = vld [vmem:[%s3051_s2 + $0x124] sm:$0xf] }
  0xc5   :  { %v1088_v31 = vpop.f32.mrf.mxu0  ;;  %1625 = vmatpush.bf16.msrb.mxu3 %v2427_v29 }
  0xc6   :  { %1606 = vmatpush.bf16.msrb.mxu1 %v2243_v34  ;;  %v1089_v53 = vadd.f32 %v1088_v31, %v1076_v50  ;;  %v1101_v54 = vpop.f32.mrf.mxu1  ;;  %v2415_v34 = vor.u32 %v2617_v28, %v2414_v27  ;;  %v2613_v50 = vld [vmem:[%s3051_s2 + $0x144] sm:$0xf0]  ;;  %v2612_v31 = vld [vmem:[%s3051_s2 + $0x144] sm:$0xf] }
  0xc7   :  { %1619 = vmatpush.bf16.msrb.mxu2 %v2307_v11  ;;  %v2399_v36 = vor.u32 %v2613_v50, %v2398_v49 }
  0xc8   :  { %v1102_v58 = vadd.f32 %v1101_v54, %v1089_v53  ;;  %1587 = vmatpush.bf16.msrb.mxu0 %v2415_v34  ;;  %v2403_v53 = vor.u32 %v2612_v31, %v2400_v51  ;;  %v2390_v54 = vld [vmem:[%s3051_s2 + $0x130] sm:$0xf] }
  0xc9   :  { %1626 = vmatpush.bf16.msrb.mxu3 %v2419_v35  ;;  %v2391_v61 = vor.u32 %v2611_v56, %v2390_v54 }
  0xca   :  { %v1261_v62 = vmax.f32 %v1102_v58, 0.0  ;;  %v2392_v58 = vld [vmem:[%s3051_s2 + $0x138] sm:$0xf0] }
  0xcc   :  { %v1264_v3 = vpack.c.bf16 %v1261_v62, %v1261_v62  ;;  %1588 = vmatpush.bf16.msrb.mxu0 %v2407_v43  ;;  %v2395_v62 = vor.u32 %v2610_v57, %v2392_v58 }
  0xcd   :  { %v1114_v4 = vpop.f32.mrf.mxu2  ;;  %v1090_v5 = vpop.f32.mrf.mxu0  ;;  %1627 = vmatpush.bf16.msrb.mxu3 %v2411_v47 }
  0xce   :  { %1568 = vmatmul.bf16.vlgmr.msra.gmra.mxu2 %v1264_v3  ;;  %1607 = vmatmul.bf16.vlgmr.msrb.gmra.mxu1 %v1264_v3  ;;  %v1103_v9 = vpop.f32.mrf.mxu1  ;;  %v1127_v21 = vpop.f32.mrf.mxu3  ;;  %v1115_v15 = vadd.f32 %v1114_v4, %v233_v13  ;;  %v2384_v3 = vld [vmem:[%s3051_s2 + $0x128] sm:$0xf0]  ;;  %v2383_v4 = vor.u32 %v2609_v1, %v2382_v63  ;;  %v2605_v13 = vld [vmem:[%s3051_s2 + $0x104] sm:$0xf0] }
  0xcf   :  { %v2387_v5 = vor.u32 %v2608_v2, %v2384_v3  ;;  %v2375_v9 = vor.u32 %v2607_v7, %v2374_v6 }
  0xd0   :  { %v1128_v16 = vadd.f32 %v1127_v21, %v1115_v15  ;;  %1589 = vmatpush.bf16.msrb.mxu0 %v2399_v36 }
  0xd1   :  { %1628 = vmatpush.bf16.msrb.mxu3 %v2403_v53 }
  0xd4   :  { %1590 = vmatpush.bf16.msrb.mxu0 %v2391_v61 }
  0xd5   :  { %v1116_v12 = vpop.f32.mrf.mxu2  ;;  %1629 = vmatpush.bf16.msrb.mxu3 %v2395_v62 }
  0xd6   :  { %v1129_v14 = vpop.f32.mrf.mxu3  ;;  %v2366_v12 = vld [vmem:[%s3051_s2 + $0x100] sm:$0xf] }
  0xd7   :  { %v2604_v14 = vld [vmem:[%s3051_s2 + $0x104] sm:$0xf]  ;;  %v2367_v15 = vor.u32 %v2605_v13, %v2366_v12 }
  0xd8   :  { %1591 = vmatpush.bf16.msrb.mxu0 %v2383_v4 }
  0xd9   :  { %1630 = vmatpush.bf16.msrb.mxu3 %v2387_v5 }
  0xdc   :  { %1592 = vmatpush.bf16.msrb.mxu0 %v2375_v9 }
  0xdd   :  { %1631 = vmatpush.bf16.msrb.mxu3 %v2379_v20 }
  0xe0   :  { %1593 = vmatpush.bf16.msrb.mxu0 %v2367_v15 }
  0xe5   :  { %v1140_v17 = vpop.f32.mrf.mxu0 }
  0xe6   :  { %v1141_v18 = vadd.f32 %v1140_v17, %v1128_v16  ;;  %v1153_v19 = vpop.f32.mrf.mxu1  ;;  %v2368_v16 = vld [vmem:[%s3051_s2 + $0x108] sm:$0xf0] }
  0xe7   :  { %v2371_v17 = vor.u32 %v2604_v14, %v2368_v16 }
  0xe8   :  { %v1154_v33 = vadd.f32 %v1153_v19, %v1141_v18 }
  0xe9   :  { %1632 = vmatpush.bf16.msrb.mxu3 %v2371_v17 }
  0xed   :  { %v1166_v37 = vpop.f32.mrf.mxu2  ;;  %v1142_v42 = vpop.f32.mrf.mxu0 }
  0xee   :  { %v1167_v41 = vadd.f32 %v1166_v37, %v1154_v33  ;;  %v1179_v45 = vpop.f32.mrf.mxu3  ;;  %v1155_v46 = vpop.f32.mrf.mxu1 }
  0xf0   :  { %v1180_v48 = vadd.f32 %v1179_v45, %v1167_v41 }
  0xf2   :  { %v1262_v52 = vmax.f32 %v1180_v48, 0.0  ;;  %v35_v48 = vld [vmem:[%s3052_s3 + $0x3] sm:$0x3] }
  0xf3   :  { %v1316_v49 = vperm.slane %v35_v48, 0  ;;  %v1317_v31 = vperm.slane %v35_v48, 1 }
  0xf4   :  { %v1265_v55 = vpack.c.bf16 %v1262_v52, %v1262_v52 }
  0xf5   :  { %v1168_v59 = vpop.f32.mrf.mxu2 }
  0xf6   :  { %1581 = vmatmul.bf16.vlgmr.msra.gmra.mxu3 %v1265_v55  ;;  %1620 = vmatmul.bf16.vlgmr.msrb.gmra.mxu2 %v1265_v55  ;;  %v1181_v60 = vpop.f32.mrf.mxu3 }
 0x105   :  { %v1192_v21 = vpop.f32.mrf.mxu0 }
 0x106   :  { %v1205_v11 = vpop.f32.mrf.mxu1  ;;  %v1193_v25 = vadd.f32 %v1192_v21, %v234_v24 }
 0x108   :  { %v1206_v28 = vadd.f32 %v1205_v11, %v1193_v25 }
 0x10d   :  { %v1194_v18 = vpop.f32.mrf.mxu0  ;;  %v1218_v22 = vpop.f32.mrf.mxu2 }
 0x10e   :  { %v1207_v19 = vpop.f32.mrf.mxu1  ;;  %v1231_v23 = vpop.f32.mrf.mxu3  ;;  %v1219_v29 = vadd.f32 %v1218_v22, %v1206_v28 }
 0x110   :  { %v1232_v30 = vadd.f32 %v1231_v23, %v1219_v29 }
 0x115   :  { %v1220_v26 = vpop.f32.mrf.mxu2 }
 0x116   :  { %v1233_v27 = vpop.f32.mrf.mxu3 }
 0x125   :  { %v1244_v32 = vpop.f32.mrf.mxu0 }
 0x126   :  { %v1245_v33 = vadd.f32 %v1244_v32, %v1232_v30  ;;  %v1257_v34 = vpop.f32.mrf.mxu1 }
 0x128   :  { %v1258_v35 = vadd.f32 %v1257_v34, %v1245_v33 }
 0x12a   :  { %v1263_v37 = vmax.f32 %v1258_v35, 0.0 }
 0x12c   :  { %v1266_v38 = vpack.c.bf16 %v1263_v37, %v1263_v37 }
 0x12d   :  { %v1246_v39 = vpop.f32.mrf.mxu0 }
 0x12e   :  { %v1259_v40 = vpop.f32.mrf.mxu1  ;;  %1594 = vmatmul.bf16.vlgmr.msrb.gmra.mxu0 %v1266_v38  ;;  %1633 = vmatmul.bf16.vlgmr.msrb.gmra.mxu3 %v1266_v38 }
 0x14b   :  { %v1608_v41 = vpop.f32.mrf.mxu1 }
 0x14c   :  { %v1609_v53 = vadd.f32 %v1608_v41, %v1317_v31 }
 0x151   :  { %v1569_v42 = vpop.f32.mrf.mxu2 }
 0x152   :  { %v1570_v50 = vadd.f32 %v1569_v42, %v1316_v49 }
 0x153   :  { %v1610_v43 = vpop.f32.mrf.mxu1 }
 0x159   :  { %v1571_v0 = vpop.f32.mrf.mxu2 }
 0x179   :  { %v1582_v44 = vpop.f32.mrf.mxu3  ;;  %v1621_v45 = vpop.f32.mrf.mxu2 }
 0x17a   :  { %v1583_v51 = vadd.f32 %v1582_v44, %v1570_v50  ;;  %v1622_v55 = vadd.f32 %v1621_v45, %v1609_v53 }
 0x181   :  { %v1584_v46 = vpop.f32.mrf.mxu3  ;;  %v1623_v47 = vpop.f32.mrf.mxu2 }
 0x1ab   :  { %v1595_v52 = vpop.f32.mrf.mxu0 }
 0x1ac   :  { %v1596_v36 = vadd.f32 %v1595_v52, %v1583_v51 }
 0x1ae   :  { %v1638_v54 = vmax.f32 %v1596_v36, 0.0 }
 0x1b0   :  { %1640 = vst [vmem:[#allocation5] sm:$0xff] %v1638_v54 }
 0x1b1   :  { %v1634_v56 = vpop.f32.mrf.mxu3 }
 0x1b2   :  { %v1635_v57 = vadd.f32 %v1634_v56, %v1622_v55 }
 0x1b3   :  { %v1597_v58 = vpop.f32.mrf.mxu0 }
 0x1b4   :  { %v1639_v59 = vmax.f32 %v1635_v57, 0.0 }
 0x1b6   :  { %1642 = vst.msk [vmem:[#allocation5 + $0x8] sm:$0xff] %vm1641_vm0, %v1639_v59 }
 0x1b7   :  { %1653 = dma.vmem_to_hbm [thread:$0]  %s1649_s0, 256, %s1651_s29, [#allocation4]  }
 0x1b9   :  { %v1636_v60 = vpop.f32.mrf.mxu3 }
 0x1ba   :  { %2674 = dma.done.wait [#allocation4], 256  }
 0x1bb   :  { %2675 = vsyncadd [#allocation4], 4294967040 }
 0x1bc   :  { %1658 = vsyncpa [#allocation3], 1 }
 0x1bd   :  { %1659 = vsyncpa [#allocation4], 1 }

</bundles_post_ra>
